<compile_context>
chip_gen: v6e
topology: v6e:2x2x1
jax: 0.10.0
libtpu: 0.0.40
codegen_flags: <defaults>
</compile_context>

<pallas_src>
import functools

import jax
import jax.numpy as jnp
from jax import lax
from jax.experimental import pallas as pl
from jax.experimental.pallas import tpu as pltpu


def _pooler_kernel(tok_ref, mask_ref, hq_ref, hm_ref, const_ref,
                   wk_ref, wv_ref, wo_ref,
                   out_ref, num_scr, z_scr,
                   *, num_heads, head_dim, block_b, seq, num_rels, rpad):
    # tok_ref:   [TB, S, H]      token block (input dtype; bf16 OK)
    # mask_ref:  [TB, Rpad, S]   int8, 1 = valid key (rows >= R are all-zero padding)
    # hq_ref:    [nh, H]         per-head CLS query rows, pre-scaled by 1/sqrt(hd)
    # hm_ref:    [nh, H]         head map: hm[h, d] = 1 iff hidden dim d belongs to head h
    # const_ref: [8, H]  f32     row0=bk row1=bv row2=bo row3=v_cls row4[:nh]=s_cls
    # out_ref:   [TB, R, H]
    # num_scr:   [TB*Rpad, H]  f32  stacked softmax numerators
    # z_scr:     [TB*Rpad, nh] f32  stacked softmax denominators
    f32 = jnp.float32
    hidden = num_heads * head_dim
    cdt = tok_ref.dtype                          # MXU operand dtype (f32 or bf16)

    def mm(a, b):                                # [M,K] @ [K,N], f32 accumulation
        return jnp.dot(a, b, preferred_element_type=f32)

    def mm_t(a, b):                              # contract last dims: [M,K] x [N,K] -> [M,N]
        return lax.dot_general(a, b, (((1,), (1,)), ((), ())),
                               preferred_element_type=f32)

    hq = hq_ref[...]                             # [nh, H]  cdt
    hm = hm_ref[...]                             # [nh, H]  cdt (0/1)
    bk = const_ref[0:1, :]                       # [1, H]   f32
    bv = const_ref[1:2, :]
    bo = const_ref[2:3, :]
    v_cls = const_ref[3:4, :]                    # [1, H]   f32
    s_cls = const_ref[4:5, 0:num_heads]          # [1, nh]  f32

    # ---- batched K/V projection over the whole batch block (two big MXU passes) ----
    tok = tok_ref[...].reshape(block_b * seq, hidden)            # [TB*S, H]
    k = mm(tok, wk_ref[...]) + bk                                # [TB*S, H] f32
    v = mm(tok, wv_ref[...]) + bv                                # [TB*S, H] f32

    # ---- per-head CLS-query scores; per-batch-element softmax max (f32 math) ----
    # TODO(synk): the hq matmul does nh-redundant MACs; a VPU/XLU segment-sum variant may
    # free MXU cycles at large H — keep the matmul as filler unless profiling says otherwise.
    scores = mm_t(k.astype(cdt), hq)                             # [TB*S, nh] f32
    s3 = scores.reshape(block_b, seq, num_heads)                 # [TB, S, nh]
    m = jnp.maximum(jnp.max(s3, axis=1, keepdims=True), s_cls[None])   # [TB, 1, nh]
    e = jnp.exp(s3 - m).reshape(block_b * seq, num_heads)        # [TB*S, nh]
    e_cls = jnp.exp(s_cls - m[:, 0, :])                          # [TB, nh]

    # ---- hm expansions batched over the whole block (one MXU pass each) ----
    ev = mm(e.astype(cdt), hm) * v                               # [TB*S, H]  e_{head(d)}[s]*v[s,d]
    cls_num = mm(e_cls.astype(cdt), hm) * v_cls                  # [TB, H]    CLS numerator rows

    ev_c = ev.astype(cdt)
    e_c = e.astype(cdt)
    masks = mask_ref[...].astype(cdt)                            # [TB, Rpad, S] 0/1, cast once

    # Per-batch-element relation reduction: only the two mask matmuls remain in the loop.
    # All slab stores are full, sublane-aligned [Rpad, *] stores (mask padded in wrapper).
    for t in range(block_b):                                     # static, modest trip count
        msk = masks[t]                                           # [Rpad, S]
        ev_t = ev_c[t * seq:(t + 1) * seq, :]                    # [S, H]
        e_t = e_c[t * seq:(t + 1) * seq, :]                      # [S, nh]
        num_scr[t * rpad:(t + 1) * rpad, :] = mm(msk, ev_t) + cls_num[t:t + 1, :]
        z_scr[t * rpad:(t + 1) * rpad, :] = mm(msk, e_t) + e_cls[t:t + 1, :]

    # ---- normalize (reciprocal on [*, nh] then expand), project, store ----
    z = jnp.maximum(z_scr[...], jnp.finfo(f32).tiny)             # guards all-masked underflow
    if cdt == jnp.dtype(jnp.bfloat16):
        zinv = pl.reciprocal(z, approx=True)                     # EUP slot, essentially free
    else:
        zinv = 1.0 / z                                           # exact on the f32 path
    ctx = num_scr[...] * mm(zinv.astype(cdt), hm)                # [TB*Rpad, H] f32
    out2d = mm(ctx.astype(cdt), wo_ref[...]) + bo                # [TB*Rpad, H] f32
    for t in range(block_b):                                     # lane-dense [R, H] slab stores
        out_ref[t] = out2d[t * rpad:t * rpad + num_rels, :].astype(out_ref.dtype)


def _auto_block_b(batch, seq):
    """Largest divisor of `batch` (capped) targeting ~256-512 MXU rows per grid step while
    keeping >= 2 grid steps so both v7x TensorCores get work under 'parallel' semantics."""
    best = 1
    for cand in range(1, batch + 1):
        if batch % cand or cand > 16:            # cap keeps the unrolled per-batch loop modest
            continue
        if cand > 1 and cand * seq > 512:
            continue
        if batch >= 2 and (batch // cand) < 2:
            continue
        best = cand
    return best


def relation_context_attention_pooler_self(token_reps, context_masks, params, *, block_b=None):
    B, S, H = token_reps.shape
    _, R, _ = context_masks.shape
    nh = params["num_heads"]
    assert H % nh == 0
    hd = H // nh

    if block_b is None:
        block_b = _auto_block_b(B, S)
    assert B % block_b == 0, "block_b must divide the batch size"

    dt = token_reps.dtype
    f32 = jnp.float32
    rpad = -(-R // 8) * 8                                        # sublane-aligned slab stride

    # --- wrapper-side precompute of everything that only involves the CLS token (f32) ---
    wq32 = params["wq"].astype(f32)
    wk32 = params["wk"].astype(f32)
    wv32 = params["wv"].astype(f32)
    cls = params["cls"].astype(f32).reshape(1, H)
    q = (cls @ wq32 + params["bq"].astype(f32)) * (1.0 / (hd ** 0.5))     # [1, H]
    k_cls = cls @ wk32 + params["bk"].astype(f32)                          # [1, H]
    v_cls = cls @ wv32 + params["bv"].astype(f32)                          # [1, H]
    head_of = jnp.arange(H, dtype=jnp.int32) // hd
    hm = (head_of[None, :] == jnp.arange(nh, dtype=jnp.int32)[:, None]).astype(f32)  # [nh, H]
    hq = hm * q                                                            # [nh, H]
    s_cls = jnp.sum(hq * k_cls, axis=1)                                    # [nh]

    consts = jnp.zeros((8, H), f32)                              # packed [1,H] constants
    consts = consts.at[0].set(params["bk"].astype(f32))
    consts = consts.at[1].set(params["bv"].astype(f32))
    consts = consts.at[2].set(params["bo"].astype(f32))
    consts = consts.at[3].set(v_cls[0])
    consts = consts.at[4, :nh].set(s_cls)

    # TODO(synk): on v7x at large H, cast these to bf16 so 3 resident HxH weights fit 64 MiB.
    wk_d = params["wk"].astype(dt)
    wv_d = params["wv"].astype(dt)
    wo_d = params["wo"].astype(dt)
    hq_d = hq.astype(dt)
    hm_d = hm.astype(dt)

    masks = context_masks
    if rpad != R:                                                # pad relation axis -> aligned slabs
        masks = jnp.concatenate(
            [masks, jnp.zeros((B, rpad - R, S), dtype=masks.dtype)], axis=1)
    masks = masks.astype(jnp.int8)                               # 1 byte / key

    grid_steps = B // block_b
    isz = jnp.dtype(dt).itemsize

    # --- VMEM budget from actual buffer sizes (raises the scoped cap appropriately) ---
    const_bytes = (3 * H * H + 2 * max(nh, 8) * H) * isz + 8 * H * 4     # single-buffered
    stream_bytes = 2 * (block_b * S * H * isz + block_b * rpad * S + block_b * R * H * isz)
    scratch_bytes = block_b * rpad * (H + 128) * 4
    temp_bytes = block_b * S * (4 * H + 2 * 128) * 4                     # k/v/ev + scores/e f32
    need = const_bytes + stream_bytes + scratch_bytes + temp_bytes
    phys_vmem = 128 * 1024 * 1024
    try:
        phys_vmem = int(pltpu.get_tpu_info().vmem_capacity_bytes)        # 64 MiB on v7x
    except Exception:
        pass
    vmem_limit = max(16 * 1024 * 1024, min(int(phys_vmem * 0.85), 2 * need + (8 << 20)))

    flops = int(grid_steps * (
        4 * block_b * S * H * H                              # K/V projections
        + 4 * block_b * S * nh * H                           # scores + e@hm
        + 2 * block_b * nh * H                               # CLS numerator expansion
        + block_b * (2 * rpad * S * H + 2 * rpad * S * nh)   # mask matmuls
        + 2 * block_b * rpad * nh * H                        # zinv expansion
        + 2 * block_b * rpad * H * H))                       # output projection
    bytes_accessed = int(const_bytes + B * S * H * isz + B * rpad * S + B * R * H * isz)
    cost = pl.CostEstimate(flops=flops, transcendentals=int(B * nh * (S + 1)),
                           bytes_accessed=bytes_accessed)

    kernel = functools.partial(_pooler_kernel, num_heads=nh, head_dim=hd,
                               block_b=block_b, seq=S, num_rels=R, rpad=rpad)

    def run(single_buffer_consts):
        if single_buffer_consts:
            # Grid-invariant operands: single buffer (no pointless double-buffer residency).
            const_spec = lambda shape: pl.BlockSpec(
                shape, lambda b: (0,) * len(shape), pipeline_mode=pl.Buffered(1))
        else:
            const_spec = lambda shape: pl.BlockSpec(shape, lambda b: (0,) * len(shape))
        return pl.pallas_call(
            kernel,
            out_shape=jax.ShapeDtypeStruct((B, R, H), dt),
            grid=(grid_steps,),
            in_specs=[
                pl.BlockSpec((block_b, S, H), lambda b: (b, 0, 0)),      # tokens
                pl.BlockSpec((block_b, rpad, S), lambda b: (b, 0, 0)),   # padded masks (int8)
                const_spec((nh, H)),                                     # hq (pre-scaled)
                const_spec((nh, H)),                                     # hm
                const_spec((8, H)),                                      # packed f32 constants
                const_spec((H, H)),                                      # wk
                const_spec((H, H)),                                      # wv
                const_spec((H, H)),                                      # wo
            ],
            out_specs=pl.BlockSpec((block_b, R, H), lambda b: (b, 0, 0)),
            scratch_shapes=[pltpu.VMEM((block_b * rpad, H), jnp.float32),
                            pltpu.VMEM((block_b * rpad, nh), jnp.float32)],
            compiler_params=pltpu.CompilerParams(
                dimension_semantics=("parallel",),
                vmem_limit_bytes=int(vmem_limit)),
            cost_estimate=cost,
        )(token_reps, masks, hq_d, hm_d, consts, wk_d, wv_d, wo_d)

    try:
        return run(single_buffer_consts=True)
    except Exception:
        # TODO(synk): fallback for jax builds without BlockSpec(pipeline_mode=pl.Buffered(1)).
        return run(single_buffer_consts=False)


def reference(token_reps, context_masks, params):
    """Pure-JAX reference mirroring the PyTorch forward (eval mode)."""
    B, S, H = token_reps.shape
    _, R, _ = context_masks.shape
    nh = params["num_heads"]
    hd = H // nh
    cls = params["cls"]
    x = jnp.concatenate(
        [jnp.broadcast_to(cls[None, None, :], (B, 1, H)), token_reps], axis=1)   # [B, S1, H]
    mask = jnp.concatenate([jnp.ones((B, R, 1), dtype=bool), context_masks], axis=-1)

    q = x[:, 0:1, :] @ params["wq"] + params["bq"]
    k = x @ params["wk"] + params["bk"]
    v = x @ params["wv"] + params["bv"]
    qh = q.reshape(B, 1, nh, hd).transpose(0, 2, 1, 3)
    kh = k.reshape(B, -1, nh, hd).transpose(0, 2, 1, 3)
    vh = v.reshape(B, -1, nh, hd).transpose(0, 2, 1, 3)
    scores = jnp.einsum("bhqd,bhkd->bhqk", qh, kh) / jnp.sqrt(hd)
    bias = jnp.where(mask, 0.0, -1e30)[:, :, None, None, :]
    s = scores[:, None] + bias
    p = jax.nn.softmax(s, axis=-1)
    ctx = jnp.einsum("brhqk,bhkd->brhqd", p, vh)
    ctx = ctx.transpose(0, 1, 3, 2, 4).reshape(B, R, H)
    return ctx @ params["wo"] + params["bo"]


def init_params(key, hidden_dim, num_heads):
    ks = jax.random.split(key, 9)
    n = lambda k, shape, s: (jax.random.normal(k, shape, dtype=jnp.float32) * s)
    return {
        "num_heads": num_heads,
        "cls": n(ks[0], (hidden_dim,), 0.1),
        "wq": n(ks[1], (hidden_dim, hidden_dim), 0.02),
        "wk": n(ks[2], (hidden_dim, hidden_dim), 0.02),
        "wv": n(ks[3], (hidden_dim, hidden_dim), 0.02),
        "wo": n(ks[4], (hidden_dim, hidden_dim), 0.02),
        "bq": n(ks[5], (hidden_dim,), 0.02),
        "bk": n(ks[6], (hidden_dim,), 0.02),
        "bv": n(ks[7], (hidden_dim,), 0.02),
        "bo": n(ks[8], (hidden_dim,), 0.02),
    }


if __name__ == "__main__":
    B, S, H, R, NH = 2, 8, 32, 6, 4
    key = jax.random.PRNGKey(0)
    k_params, k_x, k_m = jax.random.split(key, 3)

    params = init_params(k_params, H, NH)
    token_reps = jax.random.normal(k_x, (B, S, H), dtype=jnp.float32)
    context_masks = jax.random.bernoulli(k_m, p=0.6, shape=(B, R, S))
    # include an all-False relation mask to exercise the "only CLS valid" path
    context_masks = context_masks.at[0, 0, :].set(False)

    ref = reference(token_reps, context_masks, params)

    # f32 path: auto block_b (>= 2 grid steps for megacore) and explicit batch-blocked run.
    for tb in (None, 2):
        out = relation_context_attention_pooler_self(
            token_reps, context_masks, params, block_b=tb)
        out = jax.block_until_ready(out)
        assert out.shape == (B, R, H)
        assert jnp.allclose(out, ref, atol=1e-4, rtol=1e-4), f"mismatch (block_b={tb})"

    # bf16 MXU-operand path (activations/weights bf16, softmax math stays f32).
    out_bf16 = relation_context_attention_pooler_self(
        token_reps.astype(jnp.bfloat16), context_masks, params, block_b=2)
    out_bf16 = jax.block_until_ready(out_bf16)
    assert out_bf16.dtype == jnp.bfloat16
    assert jnp.allclose(out_bf16.astype(jnp.float32), ref, atol=5e-2, rtol=5e-2), "bf16 mismatch"

    print("KERNEL_OK")
</pallas_src>

<mosaic_0001>
module attributes {stable_mosaic.version = 11 : i64} {
  func.func @_pooler_kernel(%arg0: i32, %arg1: memref<1x8x32xf32, #tpu.memory_space<vmem>>, %arg2: memref<1x8x8xi8, #tpu.memory_space<vmem>>, %arg3: memref<4x32xf32, #tpu.memory_space<vmem>>, %arg4: memref<4x32xf32, #tpu.memory_space<vmem>>, %arg5: memref<8x32xf32, #tpu.memory_space<vmem>>, %arg6: memref<32x32xf32, #tpu.memory_space<vmem>>, %arg7: memref<32x32xf32, #tpu.memory_space<vmem>>, %arg8: memref<32x32xf32, #tpu.memory_space<vmem>>, %arg9: memref<1x6x32xf32, #tpu.memory_space<vmem>>, %arg10: memref<8x32xf32, #tpu.memory_space<vmem>>, %arg11: memref<8x4xf32, #tpu.memory_space<vmem>>) attributes {dimension_semantics = [#tpu.dimension_semantics<parallel>], iteration_bounds = array<i64: 2>, scalar_prefetch = 0 : i64, scratch_operands = 2 : i64, tpu.core_type = #tpu.core_type<tc>, window_params = [{transform_indices = @transform_0, window_bounds = array<i64: 1, 8, 32>}, {transform_indices = @transform_1, window_bounds = array<i64: 1, 8, 8>}, {pipeline_mode = #tpu.pipeline_mode<synchronous>, transform_indices = @transform_2, window_bounds = array<i64: 4, 32>}, {pipeline_mode = #tpu.pipeline_mode<synchronous>, transform_indices = @transform_3, window_bounds = array<i64: 4, 32>}, {pipeline_mode = #tpu.pipeline_mode<synchronous>, transform_indices = @transform_4, window_bounds = array<i64: 8, 32>}, {pipeline_mode = #tpu.pipeline_mode<synchronous>, transform_indices = @transform_5, window_bounds = array<i64: 32, 32>}, {pipeline_mode = #tpu.pipeline_mode<synchronous>, transform_indices = @transform_6, window_bounds = array<i64: 32, 32>}, {pipeline_mode = #tpu.pipeline_mode<synchronous>, transform_indices = @transform_7, window_bounds = array<i64: 32, 32>}, {transform_indices = @transform_8, window_bounds = array<i64: 1, 6, 32>}]} {
    %c0 = arith.constant 0 : index
    %c0_0 = arith.constant 0 : index
    %0 = vector.load %arg3[%c0, %c0_0] : memref<4x32xf32, #tpu.memory_space<vmem>>, vector<4x32xf32>
    %c0_1 = arith.constant 0 : index
    %c0_2 = arith.constant 0 : index
    %1 = vector.load %arg4[%c0_1, %c0_2] : memref<4x32xf32, #tpu.memory_space<vmem>>, vector<4x32xf32>
    %c0_3 = arith.constant 0 : index
    %c0_4 = arith.constant 0 : index
    %2 = vector.load %arg5[%c0_3, %c0_4] : memref<8x32xf32, #tpu.memory_space<vmem>>, vector<1x32xf32>
    %c1 = arith.constant 1 : index
    %c0_5 = arith.constant 0 : index
    %3 = vector.load %arg5[%c1, %c0_5] : memref<8x32xf32, #tpu.memory_space<vmem>>, vector<1x32xf32>
    %c2 = arith.constant 2 : index
    %c0_6 = arith.constant 0 : index
    %4 = vector.load %arg5[%c2, %c0_6] : memref<8x32xf32, #tpu.memory_space<vmem>>, vector<1x32xf32>
    %c3 = arith.constant 3 : index
    %c0_7 = arith.constant 0 : index
    %5 = vector.load %arg5[%c3, %c0_7] : memref<8x32xf32, #tpu.memory_space<vmem>>, vector<1x32xf32>
    %c4 = arith.constant 4 : index
    %c0_8 = arith.constant 0 : index
    %6 = vector.load %arg5[%c4, %c0_8] : memref<8x32xf32, #tpu.memory_space<vmem>>, vector<1x4xf32>
    %c0_9 = arith.constant 0 : index
    %c0_10 = arith.constant 0 : index
    %c0_11 = arith.constant 0 : index
    %7 = vector.load %arg1[%c0_9, %c0_10, %c0_11] : memref<1x8x32xf32, #tpu.memory_space<vmem>>, vector<1x8x32xf32>
    %8 = vector.shape_cast %7 : vector<1x8x32xf32> to vector<8x32xf32>
    %c0_12 = arith.constant 0 : index
    %c0_13 = arith.constant 0 : index
    %9 = vector.load %arg6[%c0_12, %c0_13] : memref<32x32xf32, #tpu.memory_space<vmem>>, vector<32x32xf32>
    %cst = arith.constant dense<0.000000e+00> : vector<8x32xf32>
    %10 = tpu.matmul %8, %9, %cst {dimension_numbers = #tpu.dot_dimension_numbers<[1], [0], [0], [1], [0, 0, 1, 1], [], []>} : vector<8x32xf32>, vector<32x32xf32>, vector<8x32xf32> -> vector<8x32xf32>
    %11 = vector.broadcast %2 : vector<1x32xf32> to vector<8x32xf32>
    %12 = arith.addf %10, %11 : vector<8x32xf32>
    %c0_14 = arith.constant 0 : index
    %c0_15 = arith.constant 0 : index
    %13 = vector.load %arg7[%c0_14, %c0_15] : memref<32x32xf32, #tpu.memory_space<vmem>>, vector<32x32xf32>
    %cst_16 = arith.constant dense<0.000000e+00> : vector<8x32xf32>
    %14 = tpu.matmul %8, %13, %cst_16 {dimension_numbers = #tpu.dot_dimension_numbers<[1], [0], [0], [1], [0, 0, 1, 1], [], []>} : vector<8x32xf32>, vector<32x32xf32>, vector<8x32xf32> -> vector<8x32xf32>
    %15 = vector.broadcast %3 : vector<1x32xf32> to vector<8x32xf32>
    %16 = arith.addf %14, %15 : vector<8x32xf32>
    %cst_17 = arith.constant dense<0.000000e+00> : vector<8x4xf32>
    %17 = tpu.matmul %12, %0, %cst_17 {dimension_numbers = #tpu.dot_dimension_numbers<[1], [1], [0], [0], [0, 0, 1, 0], [], []>} : vector<8x32xf32>, vector<4x32xf32>, vector<8x4xf32> -> vector<8x4xf32>
    %18 = vector.shape_cast %17 : vector<8x4xf32> to vector<1x8x4xf32>
    %cst_18 = arith.constant dense<0xFF800000> : vector<1x4xf32>
    %19 = vector.multi_reduction <maximumf>, %18, %cst_18 [1] : vector<1x8x4xf32> to vector<1x4xf32>
    %20 = vector.shape_cast %19 : vector<1x4xf32> to vector<1x1x4xf32>
    %21 = vector.shape_cast %6 : vector<1x4xf32> to vector<1x1x4xf32>
    %22 = arith.maximumf %20, %21 : vector<1x1x4xf32>
    %23 = vector.broadcast %22 : vector<1x1x4xf32> to vector<1x8x4xf32>
    %24 = arith.subf %18, %23 : vector<1x8x4xf32>
    %25 = math.exp %24 : vector<1x8x4xf32>
    %26 = vector.shape_cast %25 : vector<1x8x4xf32> to vector<8x4xf32>
    %27 = vector.shape_cast %22 : vector<1x1x4xf32> to vector<1x4xf32>
    %28 = arith.subf %6, %27 : vector<1x4xf32>
    %29 = math.exp %28 : vector<1x4xf32>
    %cst_19 = arith.constant dense<0.000000e+00> : vector<8x32xf32>
    %30 = tpu.matmul %26, %1, %cst_19 {dimension_numbers = #tpu.dot_dimension_numbers<[1], [0], [0], [1], [0, 0, 1, 1], [], []>} : vector<8x4xf32>, vector<4x32xf32>, vector<8x32xf32> -> vector<8x32xf32>
    %31 = arith.mulf %30, %16 : vector<8x32xf32>
    %cst_20 = arith.constant dense<0.000000e+00> : vector<1x32xf32>
    %32 = tpu.matmul %29, %1, %cst_20 {dimension_numbers = #tpu.dot_dimension_numbers<[1], [0], [0], [1], [0, 0, 1, 1], [], []>} : vector<1x4xf32>, vector<4x32xf32>, vector<1x32xf32> -> vector<1x32xf32>
    %33 = arith.mulf %32, %5 : vector<1x32xf32>
    %c0_21 = arith.constant 0 : index
    %c0_22 = arith.constant 0 : index
    %c0_23 = arith.constant 0 : index
    %34 = vector.load %arg2[%c0_21, %c0_22, %c0_23] : memref<1x8x8xi8, #tpu.memory_space<vmem>>, vector<1x8x8xi8>
    %35 = arith.sitofp %34 : vector<1x8x8xi8> to vector<1x8x8xf32>
    %36 = vector.shape_cast %35 : vector<1x8x8xf32> to vector<8x8xf32>
    %cst_24 = arith.constant dense<0.000000e+00> : vector<8x32xf32>
    %37 = tpu.matmul %36, %31, %cst_24 {dimension_numbers = #tpu.dot_dimension_numbers<[1], [0], [0], [1], [0, 0, 1, 1], [], []>} : vector<8x8xf32>, vector<8x32xf32>, vector<8x32xf32> -> vector<8x32xf32>
    %38 = vector.broadcast %33 : vector<1x32xf32> to vector<8x32xf32>
    %39 = arith.addf %37, %38 : vector<8x32xf32>
    %c0_25 = arith.constant 0 : index
    %c0_26 = arith.constant 0 : index
    %40 = vector.load %arg10[%c0_25, %c0_26] : memref<8x32xf32, #tpu.memory_space<vmem>>, vector<8x32xf32>
    tpu.vector_store %arg10[%c0_25, %c0_26], %39 {strides = array<i32>} : memref<8x32xf32, #tpu.memory_space<vmem>>, vector<8x32xf32>,
    %cst_27 = arith.constant dense<0.000000e+00> : vector<8x4xf32>
    %41 = tpu.matmul %36, %26, %cst_27 {dimension_numbers = #tpu.dot_dimension_numbers<[1], [0], [0], [1], [0, 0, 1, 1], [], []>} : vector<8x8xf32>, vector<8x4xf32>, vector<8x4xf32> -> vector<8x4xf32>
    %42 = vector.broadcast %29 : vector<1x4xf32> to vector<8x4xf32>
    %43 = arith.addf %41, %42 : vector<8x4xf32>
    %c0_28 = arith.constant 0 : index
    %c0_29 = arith.constant 0 : index
    %44 = vector.load %arg11[%c0_28, %c0_29] : memref<8x4xf32, #tpu.memory_space<vmem>>, vector<8x4xf32>
    tpu.vector_store %arg11[%c0_28, %c0_29], %43 {strides = array<i32>} : memref<8x4xf32, #tpu.memory_space<vmem>>, vector<8x4xf32>,
    %c0_30 = arith.constant 0 : index
    %c0_31 = arith.constant 0 : index
    %45 = vector.load %arg11[%c0_30, %c0_31] : memref<8x4xf32, #tpu.memory_space<vmem>>, vector<8x4xf32>
    %cst_32 = arith.constant 1.17549435E-38 : f32
    %46 = vector.broadcast %cst_32 : f32 to vector<8x4xf32>
    %47 = arith.maximumf %45, %46 : vector<8x4xf32>
    %cst_33 = arith.constant 1.000000e+00 : f32
    %48 = vector.broadcast %cst_33 : f32 to vector<8x4xf32>
    %49 = arith.divf %48, %47 : vector<8x4xf32>
    %c0_34 = arith.constant 0 : index
    %c0_35 = arith.constant 0 : index
    %50 = vector.load %arg10[%c0_34, %c0_35] : memref<8x32xf32, #tpu.memory_space<vmem>>, vector<8x32xf32>
    %cst_36 = arith.constant dense<0.000000e+00> : vector<8x32xf32>
    %51 = tpu.matmul %49, %1, %cst_36 {dimension_numbers = #tpu.dot_dimension_numbers<[1], [0], [0], [1], [0, 0, 1, 1], [], []>} : vector<8x4xf32>, vector<4x32xf32>, vector<8x32xf32> -> vector<8x32xf32>
    %52 = arith.mulf %50, %51 : vector<8x32xf32>
    %c0_37 = arith.constant 0 : index
    %c0_38 = arith.constant 0 : index
    %53 = vector.load %arg8[%c0_37, %c0_38] : memref<32x32xf32, #tpu.memory_space<vmem>>, vector<32x32xf32>
    %cst_39 = arith.constant dense<0.000000e+00> : vector<8x32xf32>
    %54 = tpu.matmul %52, %53, %cst_39 {dimension_numbers = #tpu.dot_dimension_numbers<[1], [0], [0], [1], [0, 0, 1, 1], [], []>} : vector<8x32xf32>, vector<32x32xf32>, vector<8x32xf32> -> vector<8x32xf32>
    %55 = vector.broadcast %4 : vector<1x32xf32> to vector<8x32xf32>
    %56 = arith.addf %54, %55 : vector<8x32xf32>
    %57 = vector.extract_strided_slice %56 {offsets = [0, 0], sizes = [6, 32], strides = [1, 1]} : vector<8x32xf32> to vector<6x32xf32>
    %c0_40 = arith.constant 0 : index
    %c0_41 = arith.constant 0 : index
    %c0_42 = arith.constant 0 : index
    %58 = vector.load %arg9[%c0_40, %c0_41, %c0_42] : memref<1x6x32xf32, #tpu.memory_space<vmem>>, vector<1x6x32xf32>
    %59 = vector.shape_cast %58 : vector<1x6x32xf32> to vector<6x32xf32>
    %60 = vector.shape_cast %57 : vector<6x32xf32> to vector<1x6x32xf32>
    tpu.vector_store %arg9[%c0_40, %c0_41, %c0_42], %60 {strides = array<i32>} : memref<1x6x32xf32, #tpu.memory_space<vmem>>, vector<1x6x32xf32>,
    return
  }
  func.func @transform_0(%arg0: i32) -> (i32, i32, i32) {
    %c0_i32 = arith.constant 0 : i32
    %c0_i32_0 = arith.constant 0 : i32
    %c0_i32_1 = arith.constant 0 : i32
    return %arg0, %c0_i32, %c0_i32_0 : i32, i32, i32
  }
  func.func @transform_1(%arg0: i32) -> (i32, i32, i32) {
    %c0_i32 = arith.constant 0 : i32
    %c0_i32_0 = arith.constant 0 : i32
    %c0_i32_1 = arith.constant 0 : i32
    return %arg0, %c0_i32, %c0_i32_0 : i32, i32, i32
  }
  func.func @transform_2(%arg0: i32) -> (i32, i32) {
    %c0_i32 = arith.constant 0 : i32
    %c0_i32_0 = arith.constant 0 : i32
    %c0_i32_1 = arith.constant 0 : i32
    return %c0_i32, %c0_i32_0 : i32, i32
  }
  func.func @transform_3(%arg0: i32) -> (i32, i32) {
    %c0_i32 = arith.constant 0 : i32
    %c0_i32_0 = arith.constant 0 : i32
    %c0_i32_1 = arith.constant 0 : i32
    return %c0_i32, %c0_i32_0 : i32, i32
  }
  func.func @transform_4(%arg0: i32) -> (i32, i32) {
    %c0_i32 = arith.constant 0 : i32
    %c0_i32_0 = arith.constant 0 : i32
    %c0_i32_1 = arith.constant 0 : i32
    return %c0_i32, %c0_i32_0 : i32, i32
  }
  func.func @transform_5(%arg0: i32) -> (i32, i32) {
    %c0_i32 = arith.constant 0 : i32
    %c0_i32_0 = arith.constant 0 : i32
    %c0_i32_1 = arith.constant 0 : i32
    return %c0_i32, %c0_i32_0 : i32, i32
  }
  func.func @transform_6(%arg0: i32) -> (i32, i32) {
    %c0_i32 = arith.constant 0 : i32
    %c0_i32_0 = arith.constant 0 : i32
    %c0_i32_1 = arith.constant 0 : i32
    return %c0_i32, %c0_i32_0 : i32, i32
  }
  func.func @transform_7(%arg0: i32) -> (i32, i32) {
    %c0_i32 = arith.constant 0 : i32
    %c0_i32_0 = arith.constant 0 : i32
    %c0_i32_1 = arith.constant 0 : i32
    return %c0_i32, %c0_i32_0 : i32, i32
  }
  func.func @transform_8(%arg0: i32) -> (i32, i32, i32) {
    %c0_i32 = arith.constant 0 : i32
    %c0_i32_0 = arith.constant 0 : i32
    %c0_i32_1 = arith.constant 0 : i32
    return %arg0, %c0_i32, %c0_i32_0 : i32, i32, i32
  }
}

module attributes {stable_mosaic.version = 11 : i64} {
  func.func @_pooler_kernel(%arg0: i32, %arg1: memref<1x8x32xf32, #tpu.memory_space<vmem>>, %arg2: memref<1x8x8xi8, #tpu.memory_space<vmem>>, %arg3: memref<4x32xf32, #tpu.memory_space<vmem>>, %arg4: memref<4x32xf32, #tpu.memory_space<vmem>>, %arg5: memref<8x32xf32, #tpu.memory_space<vmem>>, %arg6: memref<32x32xf32, #tpu.memory_space<vmem>>, %arg7: memref<32x32xf32, #tpu.memory_space<vmem>>, %arg8: memref<32x32xf32, #tpu.memory_space<vmem>>, %arg9: memref<1x6x32xf32, #tpu.memory_space<vmem>>, %arg10: memref<8x32xf32, #tpu.memory_space<vmem>>, %arg11: memref<8x4xf32, #tpu.memory_space<vmem>>) attributes {dimension_semantics = [#tpu.dimension_semantics<parallel>], iteration_bounds = array<i64: 2>, scalar_prefetch = 0 : i64, scratch_operands = 2 : i64, tpu.core_type = #tpu.core_type<tc>, window_params = [{transform_indices = @transform_0, window_bounds = array<i64: 1, 8, 32>}, {transform_indices = @transform_1, window_bounds = array<i64: 1, 8, 8>}, {pipeline_mode = #tpu.pipeline_mode<synchronous>, transform_indices = @transform_2, window_bounds = array<i64: 4, 32>}, {pipeline_mode = #tpu.pipeline_mode<synchronous>, transform_indices = @transform_3, window_bounds = array<i64: 4, 32>}, {pipeline_mode = #tpu.pipeline_mode<synchronous>, transform_indices = @transform_4, window_bounds = array<i64: 8, 32>}, {pipeline_mode = #tpu.pipeline_mode<synchronous>, transform_indices = @transform_5, window_bounds = array<i64: 32, 32>}, {pipeline_mode = #tpu.pipeline_mode<synchronous>, transform_indices = @transform_6, window_bounds = array<i64: 32, 32>}, {pipeline_mode = #tpu.pipeline_mode<synchronous>, transform_indices = @transform_7, window_bounds = array<i64: 32, 32>}, {transform_indices = @transform_8, window_bounds = array<i64: 1, 6, 32>}]} {
    %c0 = arith.constant 0 : index
    %c0_0 = arith.constant 0 : index
    %0 = vector.load %arg3[%c0, %c0_0] : memref<4x32xf32, #tpu.memory_space<vmem>>, vector<4x32xf32>
    %c0_1 = arith.constant 0 : index
    %c0_2 = arith.constant 0 : index
    %1 = vector.load %arg4[%c0_1, %c0_2] : memref<4x32xf32, #tpu.memory_space<vmem>>, vector<4x32xf32>
    %c0_3 = arith.constant 0 : index
    %c0_4 = arith.constant 0 : index
    %2 = vector.load %arg5[%c0_3, %c0_4] : memref<8x32xf32, #tpu.memory_space<vmem>>, vector<1x32xf32>
    %c1 = arith.constant 1 : index
    %c0_5 = arith.constant 0 : index
    %3 = vector.load %arg5[%c1, %c0_5] : memref<8x32xf32, #tpu.memory_space<vmem>>, vector<1x32xf32>
    %c2 = arith.constant 2 : index
    %c0_6 = arith.constant 0 : index
    %4 = vector.load %arg5[%c2, %c0_6] : memref<8x32xf32, #tpu.memory_space<vmem>>, vector<1x32xf32>
    %c3 = arith.constant 3 : index
    %c0_7 = arith.constant 0 : index
    %5 = vector.load %arg5[%c3, %c0_7] : memref<8x32xf32, #tpu.memory_space<vmem>>, vector<1x32xf32>
    %c4 = arith.constant 4 : index
    %c0_8 = arith.constant 0 : index
    %6 = vector.load %arg5[%c4, %c0_8] : memref<8x32xf32, #tpu.memory_space<vmem>>, vector<1x4xf32>
    %c0_9 = arith.constant 0 : index
    %c0_10 = arith.constant 0 : index
    %c0_11 = arith.constant 0 : index
    %7 = vector.load %arg1[%c0_9, %c0_10, %c0_11] : memref<1x8x32xf32, #tpu.memory_space<vmem>>, vector<1x8x32xf32>
    %8 = vector.shape_cast %7 : vector<1x8x32xf32> to vector<8x32xf32>
    %c0_12 = arith.constant 0 : index
    %c0_13 = arith.constant 0 : index
    %9 = vector.load %arg6[%c0_12, %c0_13] : memref<32x32xf32, #tpu.memory_space<vmem>>, vector<32x32xf32>
    %cst = arith.constant dense<0.000000e+00> : vector<8x32xf32>
    %10 = tpu.matmul %8, %9, %cst {dimension_numbers = #tpu.dot_dimension_numbers<[1], [0], [0], [1], [0, 0, 1, 1], [], []>} : vector<8x32xf32>, vector<32x32xf32>, vector<8x32xf32> -> vector<8x32xf32>
    %11 = vector.broadcast %2 : vector<1x32xf32> to vector<8x32xf32>
    %12 = arith.addf %10, %11 : vector<8x32xf32>
    %c0_14 = arith.constant 0 : index
    %c0_15 = arith.constant 0 : index
    %13 = vector.load %arg7[%c0_14, %c0_15] : memref<32x32xf32, #tpu.memory_space<vmem>>, vector<32x32xf32>
    %cst_16 = arith.constant dense<0.000000e+00> : vector<8x32xf32>
    %14 = tpu.matmul %8, %13, %cst_16 {dimension_numbers = #tpu.dot_dimension_numbers<[1], [0], [0], [1], [0, 0, 1, 1], [], []>} : vector<8x32xf32>, vector<32x32xf32>, vector<8x32xf32> -> vector<8x32xf32>
    %15 = vector.broadcast %3 : vector<1x32xf32> to vector<8x32xf32>
    %16 = arith.addf %14, %15 : vector<8x32xf32>
    %cst_17 = arith.constant dense<0.000000e+00> : vector<8x4xf32>
    %17 = tpu.matmul %12, %0, %cst_17 {dimension_numbers = #tpu.dot_dimension_numbers<[1], [1], [0], [0], [0, 0, 1, 0], [], []>} : vector<8x32xf32>, vector<4x32xf32>, vector<8x4xf32> -> vector<8x4xf32>
    %18 = vector.shape_cast %17 : vector<8x4xf32> to vector<1x8x4xf32>
    %cst_18 = arith.constant dense<0xFF800000> : vector<1x4xf32>
    %19 = vector.multi_reduction <maximumf>, %18, %cst_18 [1] : vector<1x8x4xf32> to vector<1x4xf32>
    %20 = vector.shape_cast %19 : vector<1x4xf32> to vector<1x1x4xf32>
    %21 = vector.shape_cast %6 : vector<1x4xf32> to vector<1x1x4xf32>
    %22 = arith.maximumf %20, %21 : vector<1x1x4xf32>
    %23 = vector.broadcast %22 : vector<1x1x4xf32> to vector<1x8x4xf32>
    %24 = arith.subf %18, %23 : vector<1x8x4xf32>
    %25 = math.exp %24 : vector<1x8x4xf32>
    %26 = vector.shape_cast %25 : vector<1x8x4xf32> to vector<8x4xf32>
    %27 = vector.shape_cast %22 : vector<1x1x4xf32> to vector<1x4xf32>
    %28 = arith.subf %6, %27 : vector<1x4xf32>
    %29 = math.exp %28 : vector<1x4xf32>
    %cst_19 = arith.constant dense<0.000000e+00> : vector<8x32xf32>
    %30 = tpu.matmul %26, %1, %cst_19 {dimension_numbers = #tpu.dot_dimension_numbers<[1], [0], [0], [1], [0, 0, 1, 1], [], []>} : vector<8x4xf32>, vector<4x32xf32>, vector<8x32xf32> -> vector<8x32xf32>
    %31 = arith.mulf %30, %16 : vector<8x32xf32>
    %cst_20 = arith.constant dense<0.000000e+00> : vector<1x32xf32>
    %32 = tpu.matmul %29, %1, %cst_20 {dimension_numbers = #tpu.dot_dimension_numbers<[1], [0], [0], [1], [0, 0, 1, 1], [], []>} : vector<1x4xf32>, vector<4x32xf32>, vector<1x32xf32> -> vector<1x32xf32>
    %33 = arith.mulf %32, %5 : vector<1x32xf32>
    %c0_21 = arith.constant 0 : index
    %c0_22 = arith.constant 0 : index
    %c0_23 = arith.constant 0 : index
    %34 = vector.load %arg2[%c0_21, %c0_22, %c0_23] : memref<1x8x8xi8, #tpu.memory_space<vmem>>, vector<1x8x8xi8>
    %35 = arith.sitofp %34 : vector<1x8x8xi8> to vector<1x8x8xf32>
    %36 = vector.shape_cast %35 : vector<1x8x8xf32> to vector<8x8xf32>
    %cst_24 = arith.constant dense<0.000000e+00> : vector<8x32xf32>
    %37 = tpu.matmul %36, %31, %cst_24 {dimension_numbers = #tpu.dot_dimension_numbers<[1], [0], [0], [1], [0, 0, 1, 1], [], []>} : vector<8x8xf32>, vector<8x32xf32>, vector<8x32xf32> -> vector<8x32xf32>
    %38 = vector.broadcast %33 : vector<1x32xf32> to vector<8x32xf32>
    %39 = arith.addf %37, %38 : vector<8x32xf32>
    %c0_25 = arith.constant 0 : index
    %c0_26 = arith.constant 0 : index
    %40 = vector.load %arg10[%c0_25, %c0_26] : memref<8x32xf32, #tpu.memory_space<vmem>>, vector<8x32xf32>
    tpu.vector_store %arg10[%c0_25, %c0_26], %39 {strides = array<i32>} : memref<8x32xf32, #tpu.memory_space<vmem>>, vector<8x32xf32>,
    %cst_27 = arith.constant dense<0.000000e+00> : vector<8x4xf32>
    %41 = tpu.matmul %36, %26, %cst_27 {dimension_numbers = #tpu.dot_dimension_numbers<[1], [0], [0], [1], [0, 0, 1, 1], [], []>} : vector<8x8xf32>, vector<8x4xf32>, vector<8x4xf32> -> vector<8x4xf32>
    %42 = vector.broadcast %29 : vector<1x4xf32> to vector<8x4xf32>
    %43 = arith.addf %41, %42 : vector<8x4xf32>
    %c0_28 = arith.constant 0 : index
    %c0_29 = arith.constant 0 : index
    %44 = vector.load %arg11[%c0_28, %c0_29] : memref<8x4xf32, #tpu.memory_space<vmem>>, vector<8x4xf32>
    tpu.vector_store %arg11[%c0_28, %c0_29], %43 {strides = array<i32>} : memref<8x4xf32, #tpu.memory_space<vmem>>, vector<8x4xf32>,
    %c0_30 = arith.constant 0 : index
    %c0_31 = arith.constant 0 : index
    %45 = vector.load %arg11[%c0_30, %c0_31] : memref<8x4xf32, #tpu.memory_space<vmem>>, vector<8x4xf32>
    %cst_32 = arith.constant 1.17549435E-38 : f32
    %46 = vector.broadcast %cst_32 : f32 to vector<8x4xf32>
    %47 = arith.maximumf %45, %46 : vector<8x4xf32>
    %cst_33 = arith.constant 1.000000e+00 : f32
    %48 = vector.broadcast %cst_33 : f32 to vector<8x4xf32>
    %49 = arith.divf %48, %47 : vector<8x4xf32>
    %c0_34 = arith.constant 0 : index
    %c0_35 = arith.constant 0 : index
    %50 = vector.load %arg10[%c0_34, %c0_35] : memref<8x32xf32, #tpu.memory_space<vmem>>, vector<8x32xf32>
    %cst_36 = arith.constant dense<0.000000e+00> : vector<8x32xf32>
    %51 = tpu.matmul %49, %1, %cst_36 {dimension_numbers = #tpu.dot_dimension_numbers<[1], [0], [0], [1], [0, 0, 1, 1], [], []>} : vector<8x4xf32>, vector<4x32xf32>, vector<8x32xf32> -> vector<8x32xf32>
    %52 = arith.mulf %50, %51 : vector<8x32xf32>
    %c0_37 = arith.constant 0 : index
    %c0_38 = arith.constant 0 : index
    %53 = vector.load %arg8[%c0_37, %c0_38] : memref<32x32xf32, #tpu.memory_space<vmem>>, vector<32x32xf32>
    %cst_39 = arith.constant dense<0.000000e+00> : vector<8x32xf32>
    %54 = tpu.matmul %52, %53, %cst_39 {dimension_numbers = #tpu.dot_dimension_numbers<[1], [0], [0], [1], [0, 0, 1, 1], [], []>} : vector<8x32xf32>, vector<32x32xf32>, vector<8x32xf32> -> vector<8x32xf32>
    %55 = vector.broadcast %4 : vector<1x32xf32> to vector<8x32xf32>
    %56 = arith.addf %54, %55 : vector<8x32xf32>
    %57 = vector.extract_strided_slice %56 {offsets = [0, 0], sizes = [6, 32], strides = [1, 1]} : vector<8x32xf32> to vector<6x32xf32>
    %c0_40 = arith.constant 0 : index
    %c0_41 = arith.constant 0 : index
    %c0_42 = arith.constant 0 : index
    %58 = vector.load %arg9[%c0_40, %c0_41, %c0_42] : memref<1x6x32xf32, #tpu.memory_space<vmem>>, vector<1x6x32xf32>
    %59 = vector.shape_cast %58 : vector<1x6x32xf32> to vector<6x32xf32>
    %60 = vector.shape_cast %57 : vector<6x32xf32> to vector<1x6x32xf32>
    tpu.vector_store %arg9[%c0_40, %c0_41, %c0_42], %60 {strides = array<i32>} : memref<1x6x32xf32, #tpu.memory_space<vmem>>, vector<1x6x32xf32>,
    return
  }
  func.func @transform_0(%arg0: i32) -> (i32, i32, i32) {
    %c0_i32 = arith.constant 0 : i32
    %c0_i32_0 = arith.constant 0 : i32
    %c0_i32_1 = arith.constant 0 : i32
    return %arg0, %c0_i32, %c0_i32_0 : i32, i32, i32
  }
  func.func @transform_1(%arg0: i32) -> (i32, i32, i32) {
    %c0_i32 = arith.constant 0 : i32
    %c0_i32_0 = arith.constant 0 : i32
    %c0_i32_1 = arith.constant 0 : i32
    return %arg0, %c0_i32, %c0_i32_0 : i32, i32, i32
  }
  func.func @transform_2(%arg0: i32) -> (i32, i32) {
    %c0_i32 = arith.constant 0 : i32
    %c0_i32_0 = arith.constant 0 : i32
    %c0_i32_1 = arith.constant 0 : i32
    return %c0_i32, %c0_i32_0 : i32, i32
  }
  func.func @transform_3(%arg0: i32) -> (i32, i32) {
    %c0_i32 = arith.constant 0 : i32
    %c0_i32_0 = arith.constant 0 : i32
    %c0_i32_1 = arith.constant 0 : i32
    return %c0_i32, %c0_i32_0 : i32, i32
  }
  func.func @transform_4(%arg0: i32) -> (i32, i32) {
    %c0_i32 = arith.constant 0 : i32
    %c0_i32_0 = arith.constant 0 : i32
    %c0_i32_1 = arith.constant 0 : i32
    return %c0_i32, %c0_i32_0 : i32, i32
  }
  func.func @transform_5(%arg0: i32) -> (i32, i32) {
    %c0_i32 = arith.constant 0 : i32
    %c0_i32_0 = arith.constant 0 : i32
    %c0_i32_1 = arith.constant 0 : i32
    return %c0_i32, %c0_i32_0 : i32, i32
  }
  func.func @transform_6(%arg0: i32) -> (i32, i32) {
    %c0_i32 = arith.constant 0 : i32
    %c0_i32_0 = arith.constant 0 : i32
    %c0_i32_1 = arith.constant 0 : i32
    return %c0_i32, %c0_i32_0 : i32, i32
  }
  func.func @transform_7(%arg0: i32) -> (i32, i32) {
    %c0_i32 = arith.constant 0 : i32
    %c0_i32_0 = arith.constant 0 : i32
    %c0_i32_1 = arith.constant 0 : i32
    return %c0_i32, %c0_i32_0 : i32, i32
  }
  func.func @transform_8(%arg0: i32) -> (i32, i32, i32) {
    %c0_i32 = arith.constant 0 : i32
    %c0_i32_0 = arith.constant 0 : i32
    %c0_i32_1 = arith.constant 0 : i32
    return %arg0, %c0_i32, %c0_i32_0 : i32, i32, i32
  }
}

</mosaic_0001>

<bundles_post_ra>
// kernel: tpu_custom_call.1
= control target key start
LH: loop header
LB: loop body
LE: loop exit
PB: predicated region body
PF: predicated region fallthrough
CT: control target
= control target key end

     0   :  { %s2113_s0 = inlined_call_operand.hbm [shape: f32[2,8,32], index: 0, kind: input, shape index: {}]   ;;  %s2114_s1 = inlined_call_operand.hbm [shape: s8[2,8,8], index: 1, kind: input, shape index: {}]   ;;  %s2115_s2 = inlined_call_operand.hbm [shape: f32[4,32], index: 2, kind: input, shape index: {}]   ;;  %s2116_s3 = inlined_call_operand.vmem [shape: f32[4,32], index: 3, kind: input, shape index: {}]   ;;  %s2117_s4 = inlined_call_operand.hbm [shape: f32[8,32], index: 4, kind: input, shape index: {}]   ;;  %s2118_s5 = inlined_call_operand.hbm [shape: f32[32,32], index: 5, kind: input, shape index: {}]   ;;  %s2119_s6 = inlined_call_operand.hbm [shape: f32[32,32], index: 6, kind: input, shape index: {}]   ;;  %s2120_s7 = inlined_call_operand.hbm [shape: f32[32,32], index: 7, kind: input, shape index: {}]   ;;  %s2121_s8 = inlined_call_operand.vmem [shape: f32[2,6,32], index: 8, kind: output, shape index: {}]  }
   0x1   :  { %2125 = sst [smem:[#allocation20_spill]] %s2113_s0 }
   0x2   :  { %13 = vsyncpa [#allocation5], 0 }
   0x3   :  { %15 = vsyncpa [#allocation5 + $0x1], 0 }
   0x4   :  { %16 = vsyncpa [#allocation7], 0 }
   0x5   :  { %18 = vsyncpa [#allocation7 + $0x1], 0 }
   0x6   :  { %19 = vsyncpa [#allocation10], 0 }
   0x7   :  { %20 = vsyncpa [#allocation13], 0  ;;  %s1823_s27 = smov 0   ;;  %s1825_s28 = smov 0  }
   0x8   :  { %s1827_s29 = smov 0   ;;  %s1829_s30 = smov 0  }
   0x9 LB: > { %s1767_s9 = smov [#allocation8]   ;;  %s1844_s11 = sadd.s32 4294967295, %s1765_s30   ;;  %s1765_s30 = sphi %s1829_s30, %s2145_s30   ;;  %s1761_s29 = sphi %s1827_s29, %s2144_s29   ;;  %s1757_s28 = sphi %s1825_s28, %s2143_s28   ;;  %s1753_s27 = sphi %s1823_s27, %s2142_s27  }
   0xa   : > { %s248_s10 = sshll.u32 %s1767_s9, 4  ;;  %p1296_p0 = scmp.ge.s32.totalorder %s1765_s30, 1  ;;  %s249_s10 = int_to_ptr.vmem [resolvable:$true] %s248_s10 }
   0xb   : > { %p2122_p1 = scmp.eq.s32.totalorder %s1844_s11, 0  ;;  %p235_p2 = scmp.lt.s32.totalorder %s1765_s30, 3 }
   0xc   : > { %s1768_s13 = smov [#allocation9]   ;;  %s1769_s16 = smov [#allocation12]  }
   0xd   : > { %p1849_p3 = pnand %p1296_p0, %p235_p2  ;;  %s262_s14 = sshll.u32 %s1768_s13, 4  ;;  %s263_s14 = int_to_ptr.vmem [resolvable:$true] %s262_s14 }
   0xe   : > { %s285_s17 = sshll.u32 %s1769_s16, 4  ;;  %s1540_s19 = scalar_lea.vmem %s249_s10, 64  ;;  %s1861_s17 = int_to_ptr.vmem [resolvable:$true] %s285_s17 }
   0xf   : > { %s2126_s12 = scalar_select %p1849_p3, 1, 0 }
  0x10   : > { %p1448_p4 = pneg %p1849_p3  ;;  %p1541_p7 = scmp.ne.s32.totalorder %s249_s10, %s1540_s19 }
  0x11   : > { %p1548_p10 = scmp.lt.s32.totalorder %s249_s10, %s249_s10  ;;  %p1549_p11 = scmp.lt.s32.totalorder %s1540_s19, %s1540_s19 }
  0x12   : > { %p1857_p5 = pnand %p1448_p4, %p2122_p1 }
  0x13   : > { %p1550_p12 = por %p1549_p11, %p1548_p10 }
  0x14   : > { %p1865_p6 = pneg %p1857_p5 }
  0x16   : > { %p1543_p8 = pnand %p1541_p7, %p1865_p6 }
  0x18   : > { %p1544_p9 = pneg %p1543_p8 }
  0x1a   : > { %p1551_p13 = pnand %p1550_p12, %p1544_p9 }
  0x1c   : > { %1554 = shalt.err (!%p1551_p13)
}
  0x1d   : > { %1451 = dma.hbm_to_vmem [thread:$0]  (!%p1857_p5), %s2115_s2, 64, %s249_s10, [#allocation7]  }
  0x1e   : > { %s1566_s22 = scalar_lea.vmem %s263_s14, 128  ;;  %p1574_p1 = scmp.lt.s32.totalorder %s263_s14, %s263_s14 }
  0x1f   : > { %p1567_p0 = scmp.ne.s32.totalorder %s263_s14, %s1566_s22  ;;  %p1575_p7 = scmp.lt.s32.totalorder %s1566_s22, %s1566_s22 }
  0x21   : > { %p1569_p2 = pnand %p1567_p0, %p1865_p6  ;;  %p1576_p8 = por %p1575_p7, %p1574_p1 }
  0x23   : > { %p1570_p4 = pneg %p1569_p2 }
  0x25   : > { %p1577_p3 = pnand %p1576_p8, %p1570_p4 }
  0x27   : > { %1580 = shalt.err (!%p1577_p3)
}
  0x28   : > { %1454 = dma.hbm_to_vmem [thread:$0]  (!%p1857_p5), %s2117_s4, 128, %s263_s14, [#allocation10]  }
  0x29   : > { %s1592_s25 = scalar_lea.vmem %s1861_s17, 512  ;;  %p1600_p12 = scmp.lt.s32.totalorder %s1861_s17, %s1861_s17 }
  0x2a   : > { %p1593_p9 = scmp.ne.s32.totalorder %s1861_s17, %s1592_s25  ;;  %p1601_p1 = scmp.lt.s32.totalorder %s1592_s25, %s1592_s25 }
  0x2c   : > { %p1595_p10 = pnand %p1593_p9, %p1865_p6  ;;  %p1602_p13 = por %p1601_p1, %p1600_p12 }
  0x2e   : > { %p1596_p11 = pneg %p1595_p10 }
  0x30   : > { %p1603_p3 = pnand %p1602_p13, %p1596_p11 }
  0x32   : > { %1606 = shalt.err (!%p1603_p3)
}
  0x33   : > { %s1770_s26 = smov 128   ;;  %s1771_s9 = smov 8  }
  0x34   : > { %1460 = dma.hbm_to_vmem [thread:$0]  (!%p1857_p5), %s2119_s6, 512, %s1861_s17, [#allocation13], %s1770_s26, %s1770_s26, %s1771_s9  }
  0x35   : > { %s1772_s14 = smov [#allocation11]   ;;  %s1773_s19 = smov [#allocation14]  }
  0x36   : > { %s272_s16 = sshll.u32 %s1772_s14, 4  ;;  %s298_s20 = sshll.u32 %s1773_s19, 4  ;;  %s273_s16 = int_to_ptr.vmem [resolvable:$true] %s272_s16  ;;  %s299_s20 = int_to_ptr.vmem [resolvable:$true] %s298_s20 }
  0x37   : > { %s1618_s21 = scalar_lea.vmem %s273_s16, 512  ;;  %p1626_p7 = scmp.lt.s32.totalorder %s273_s16, %s273_s16 }
  0x38   : > { %p1619_p0 = scmp.ne.s32.totalorder %s273_s16, %s1618_s21  ;;  %p1627_p8 = scmp.lt.s32.totalorder %s1618_s21, %s1618_s21 }
  0x3a   : > { %p1621_p2 = pnand %p1619_p0, %p1865_p6  ;;  %p1628_p9 = por %p1627_p8, %p1626_p7 }
  0x3c   : > { %p1622_p4 = pneg %p1621_p2 }
  0x3e   : > { %p1629_p10 = pnand %p1628_p9, %p1622_p4 }
  0x40   : > { %1632 = shalt.err (!%p1629_p10)
}
  0x41   : > { %1457 = dma.hbm_to_vmem [thread:$0]  (!%p1857_p5), %s2118_s5, 512, %s273_s16, [#allocation10], %s1770_s26, %s1770_s26, %s1771_s9  }
  0x42   : > { %s1644_s23 = scalar_lea.vmem %s299_s20, 512  ;;  %p1652_p13 = scmp.lt.s32.totalorder %s299_s20, %s299_s20 }
  0x43   : > { %p1645_p11 = scmp.ne.s32.totalorder %s299_s20, %s1644_s23  ;;  %p1653_p3 = scmp.lt.s32.totalorder %s1644_s23, %s1644_s23 }
  0x45   : > { %p1647_p12 = pnand %p1645_p11, %p1865_p6  ;;  %p1654_p0 = por %p1653_p3, %p1652_p13 }
  0x47   : > { %p1648_p1 = pneg %p1647_p12 }
  0x49   : > { %p1655_p2 = pnand %p1654_p0, %p1648_p1 }
  0x4b   : > { %1658 = shalt.err (!%p1655_p2)
}
  0x4c   : > { %1463 = dma.hbm_to_vmem [thread:$0]  (!%p1857_p5), %s2120_s7, 512, %s299_s20, [#allocation13], %s1770_s26, %s1770_s26, %s1771_s9  }
  0x4d   : > { %s1919_s15 = sadd.s32 1, %s1765_s30   ;;  %s33_s10 = sadd.s32 1, %s1761_s29 }
  0x4e   : > { %s30_s18 = ssub.s32 %s1765_s30, %s1919_s15  ;;  %p40_p4 = scmp.ne.s32.totalorder %s1761_s29, %s1757_s28 }
  0x4f   : > { %p31_p6 = scmp.eq.s32.totalorder %s30_s18, 0  ;;  %p41_p7 = scmp.eq.s32.totalorder %s1765_s30, 0 }
  0x50   : > { %p46_p8 = scmp.ne.s32.totalorder %s1757_s28, %s1753_s27  ;;  %p2129_p10 = scmp.eq.s32.totalorder %s1844_s11, 0 }
  0x51   : > { %s1930_s13 = scalar_select %p31_p6, %s1761_s29, %s33_s10  }
  0x52   : > { %p42_p9 = por %p41_p7, %p40_p4  ;;  %p1934_p11 = por %p2129_p10, %p46_p8 }
  0x53   : > { %p1476_p12 = scmp.lt.s32.totalorder %s1765_s30, 2  ;;  %s1940_s26 = sand.u32 1, %s1761_s29  }
  0x54   : > { %s2130_s14 = scalar_select %p1934_p11, 1, 0 }
  0x55   : > { %s1303_s9 = sshll.u32 %s1940_s26, 3  ;;  %s1304_s16 = sshll.u32 %s1765_s30, 7 }
  0x56   : > { %s2131_s0 = sld [smem:[#allocation20_spill]]  ;;  %s316_s21 = scalar_lea.vmem [#allocation4], %s1303_s9 }
  0x57   : > { %s323_s17 = sshll.u32 %s316_s21, 4  ;;  %p1951_p5 = pnand %p1476_p12, %p42_p9  ;;  %s1949_s17 = int_to_ptr.vmem [resolvable:$true] %s323_s17 }
  0x58   : > { %s1305_s24 = sshll.u32 %s1940_s26, 1  ;;  %s313_s25 = scalar_lea.sflag [#allocation5], %s1940_s26 }
  0x59   : > { %p1661_p13 = pneg %p1951_p5 }
  0x5c   : > { %s1947_s27 = scalar_lea.hbm %s2131_s0, %s1304_s16  ;;  %s1664_s16 = scalar_lea.hbm %s2131_s0, 256 }
  0x5d   : > { %s1659_s18 = scalar_lea.hbm %s1947_s27, 128  ;;  %p1665_p2 = scmp.lt.s32.totalorder %s1947_s27, %s2131_s0 }
  0x5e   : > { %p1660_p1 = scmp.ne.s32.totalorder %s1947_s27, %s1659_s18  ;;  %p1666_p6 = scmp.lt.s32.totalorder %s1664_s16, %s1659_s18 }
  0x60   : > { %p1662_p3 = pnand %p1661_p13, %p1660_p1  ;;  %p1667_p4 = por %p1666_p6, %p1665_p2 }
  0x62   : > { %p1663_p0 = pneg %p1662_p3 }
  0x64   : > { %p1668_p7 = pnand %p1667_p4, %p1663_p0 }
  0x66   : > { %1671 = shalt.err (!%p1668_p7)
}
  0x67   : > { %s1672_s21 = scalar_lea.vmem %s1949_s17, 128  ;;  %s1774_s10 = smov [#allocation4]  }
  0x68   : > { %p1673_p8 = scmp.ne.s32.totalorder %s1949_s17, %s1672_s21  ;;  %s1677_s9 = sshll.u32 %s1774_s10, 4  ;;  %s1678_s9 = int_to_ptr.vmem [resolvable:$false] %s1677_s9 }
  0x69   : > { %s1679_s23 = scalar_lea.vmem %s1678_s9, 256  ;;  %p1680_p12 = scmp.lt.s32.totalorder %s1949_s17, %s1678_s9 }
  0x6a   : > { %p1675_p9 = pnand %p1673_p8, %p1661_p13  ;;  %p1681_p1 = scmp.lt.s32.totalorder %s1679_s23, %s1672_s21 }
  0x6c   : > { %p1676_p10 = pneg %p1675_p9  ;;  %p1682_p3 = por %p1681_p1, %p1680_p12 }
  0x6e   : > { %p1683_p2 = pnand %p1682_p3, %p1676_p10 }
  0x70   : > { %1686 = shalt.err (!%p1683_p2)
}
  0x71   : > { %1467 = dma.hbm_to_vmem [thread:$0]  (!%p1951_p5), %s1947_s27, 128, %s1949_s17, %s313_s25  }
  0x72   : > { %s1306_s18 = sshll.u32 %s1765_s30, 5  ;;  %s334_s23 = scalar_lea.vmem [#allocation6], %s1305_s24 }
  0x73   : > { %s1986_s20 = scalar_lea.hbm %s2114_s1, %s1306_s18  ;;  %s341_s21 = sshll.u32 %s334_s23, 4  ;;  %s342_s21 = int_to_ptr.vmem [resolvable:$true] %s341_s21 }
  0x74   : > { %s2133_s10 = sand.u32 1, %s1765_s30   ;;  %s1687_s0 = scalar_lea.hbm %s1986_s20, 32 }
  0x75   : > { %s331_s9 = scalar_lea.sflag [#allocation7], %s2133_s10  ;;  %p1688_p0 = scmp.ne.s32.totalorder %s1986_s20, %s1687_s0 }
  0x76   : > { %s1692_s25 = scalar_lea.hbm %s2114_s1, 64  ;;  %p1693_p7 = scmp.lt.s32.totalorder %s1986_s20, %s2114_s1 }
  0x77   : > { %p1690_p6 = pnand %p1688_p0, %p1661_p13  ;;  %p1694_p8 = scmp.lt.s32.totalorder %s1692_s25, %s1687_s0 }
  0x79   : > { %p1691_p4 = pneg %p1690_p6  ;;  %p1695_p9 = por %p1694_p8, %p1693_p7 }
  0x7b   : > { %p1696_p10 = pnand %p1695_p9, %p1691_p4 }
  0x7d   : > { %1699 = shalt.err (!%p1696_p10)
}
  0x7e   : > { %s1700_s30 = scalar_lea.vmem %s342_s21, 32  ;;  %s1775_s24 = smov [#allocation6]  }
  0x7f   : > { %p1701_p12 = scmp.ne.s32.totalorder %s342_s21, %s1700_s30  ;;  %s1705_s16 = sshll.u32 %s1775_s24, 4  ;;  %s1706_s16 = int_to_ptr.vmem [resolvable:$false] %s1705_s16 }
  0x80   : > { %s1707_s19 = scalar_lea.vmem %s1706_s16, 64  ;;  %p1708_p2 = scmp.lt.s32.totalorder %s342_s21, %s1706_s16 }
  0x81   : > { %p1703_p1 = pnand %p1701_p12, %p1661_p13  ;;  %p1709_p0 = scmp.lt.s32.totalorder %s1707_s19, %s1700_s30 }
  0x83   : > { %p1704_p3 = pneg %p1703_p1  ;;  %p1710_p6 = por %p1709_p0, %p1708_p2 }
  0x85   : > { %p1711_p11 = pnand %p1710_p6, %p1704_p3 }
  0x87   : > { %1714 = shalt.err (!%p1711_p11)
}
  0x88   : > { %1470 = dma.hbm_to_vmem [thread:$0]  (!%p1951_p5), %s1986_s20, 32, %s342_s21, %s331_s9  }
  0x89   : > { %p2134_p4 = scmp.ne.s32.totalorder %s2126_s12, 0 }
  0x8a   : > { %s352_s0 = sand.u32 (!%p2134_p4), 1, %s1757_s28   ;;  %p2135_p13 = scmp.ne.s32.totalorder (!%p2134_p4), %s2130_s14, 0 }
  0x8b   : > { %350 = sbr.rel (%p2134_p4) target bundleno = 1203 (0x4b3), region = 52  ;;  %s1308_s23 = sshll.u32 (!%p2134_p4), %s352_s0, 3 }
  0x8c   : > { %s353_s10 = scalar_lea.sflag (!%p2134_p4), [#allocation5], %s352_s0  ;;  %s2013_s27 = scalar_lea.vmem (!%p2134_p4), [#allocation4], %s1308_s23 }
  0x90   : > { %1732 = dma.done.wait (%p2135_p13), %s353_s10, 128  }
  0x91   : > { %1734 = vsyncadd (%p2135_p13), %s353_s10, 4294967168  ;;  %s361_s22 = sand.u32 1, %s1844_s11   ;;  %s1309_s17 = sshll.u32 %s352_s0, 1 }
  0x92   : > { %s362_s20 = scalar_lea.sflag [#allocation7], %s361_s22  ;;  %s2020_s21 = scalar_lea.vmem [#allocation6], %s1309_s17 }
  0x93   : > { %1736 = dma.done.wait (%p2135_p13), %s362_s20, 32  }
  0x94   : > { %1738 = vsyncadd (%p2135_p13), %s362_s20, 4294967264  ;;  %p2136_p11 = scmp.eq.s32.totalorder %s1844_s11, 0 }
  0x96   : > { %1740 = dma.done.wait (%p2136_p11), [#allocation7], 64   ;;  %p2137_p5 = pmov %p2136_p11 }
  0x98   : > { %1742 = vsyncadd (%p2137_p5), [#allocation7], 4294967232  ;;  %p2138_p7 = pmov %p2137_p5 }
  0x99   : > { %p2139_p8 = pmov %p2137_p5 }
  0x9a   : > { %1744 = dma.done.wait (%p2138_p7), [#allocation10], 640  }
  0x9b   : > { %1746 = vsyncadd (%p2139_p8), [#allocation10], 4294966656  ;;  %p2140_p9 = pmov %p2137_p5 }
  0x9c   : > { %p2141_p10 = pmov %p2137_p5 }
  0x9d   : > { %1748 = dma.done.wait (%p2140_p9), [#allocation13], 1024  }
  0x9e   : > { %1750 = vsyncadd (%p2141_p10), [#allocation13], 4294966272  ;;  %v1776_v0 = vmov 0.0   ;;  %vm1777_vm0 = vmmov 0   ;;  %v437_v1 = vld [vmem:[#allocation11 + $0x18] sm:$0xff]  ;;  %v436_v2 = vld [vmem:[#allocation11 + $0x10] sm:$0xff]  ;;  %v679_v23 = vlaneseq }
  0x9f   : > { %1361 = vmatprep.subr.mxu0 %v1776_v0  ;;  %1369 = vmatprep.mubr.msk.f32.mxu0 %vm1777_vm0, %v1776_v0  ;;  %v519_v3 = vld [vmem:[#allocation12 + $0x18] sm:$0xff]  ;;  %v435_v4 = vld [vmem:[#allocation11 + $0x8] sm:$0xff]  ;;  %v518_v5 = vld [vmem:[#allocation12 + $0x10] sm:$0xff]  ;;  %vm442_vm1 = vcmask 261120   ;;  %vm692_vm2 = vcmask 1043456   ;;  %vm670_vm3 = vcmask 31744  }
  0xa0   : > { %1372 = vmatprep.subr.mxu1 %v1776_v0  ;;  %1380 = vmatprep.mubr.msk.f32.mxu1 %vm1777_vm0, %v1776_v0  ;;  %v517_v6 = vld [vmem:[#allocation12 + $0x8] sm:$0xff]  ;;  %v434_v7 = vld [vmem:[#allocation11] sm:$0xff]  ;;  %v426_v10 = vld [vmem:[#allocation8] sm:$0xf]  ;;  %v680_v26 = vshrl.u32 %v679_v23, 7  ;;  %vm848_vm4 = vcmask 64512  }
  0xa1   : > { %1362 = vmatpush3.msra.mxu0 %v437_v1  ;;  %1373 = vmatpush3.msra.mxu1 %v519_v3  ;;  %v433_v8 = vld [vmem:[%s2013_s27] sm:$0xff]  ;;  %v1316_v11 = vld [vmem:[#allocation9] ss:$0 sm:$0xff]  ;;  %v427_v17 = vld [vmem:[%s2116_s3] sm:$0xf]  ;;  %p422_p12 = scmp.lt.s32.totalorder %s1844_s11, 1 }
  0xa2   : > { %1363 = vmatprep.subr.mxu0 %v1776_v0  ;;  %1374 = vmatprep.subr.mxu1 %v1776_v0  ;;  %v516_v9 = vld [vmem:[#allocation12] sm:$0xff]  ;;  %v432_v28 = vld [vmem:[#allocation9 + $0x4] sm:$0x1]  ;;  %v681_v30 = vsub.s32 0, %v680_v26  ;;  %v841_v37 = vld [vmem:[%s2020_s21] sm:$0x3] }
  0xa3   : > { %1364 = vmatpush3.msra.mxu0 %v436_v2  ;;  %1375 = vmatpush3.msra.mxu1 %v518_v5  ;;  %v842_v38 = vunpack.c.0.s8 %v841_v37  ;;  %v1318_v42 = vld [vmem:[#allocation9 + $0x1] ss:$0 sm:$0xff]  ;;  %v1079_v57 = vld [vmem:[#allocation14 + $0x10] sm:$0xff]  ;;  %v1078_v58 = vld [vmem:[#allocation14 + $0x8] sm:$0xff]  ;;  %s2147_s11 = smov (!%p422_p12, %s1844_s11), 1  ;;  %vm1158_vm5 = vcmask 259072  }
  0xa4   : > { %1365 = vmatprep.subr.mxu0 %v1776_v0  ;;  %1376 = vmatprep.subr.mxu1 %v1776_v0  ;;  %v1080_v56 = vld [vmem:[#allocation14 + $0x18] sm:$0xff]  ;;  %v1077_v59 = vld [vmem:[#allocation14] sm:$0xff]  ;;  %s1315_s9 = sshll.u32 %s2147_s11, 3 }
  0xa5   : > { %1366 = vmatpush3.msra.mxu0 %v435_v4  ;;  %1377 = vmatpush3.msra.mxu1 %v517_v6  ;;  %v843_v40 = vcvt.s32.f32 %v842_v38  ;;  %v431_v60 = vld [vmem:[#allocation9 + $0x3] sm:$0x1]  ;;  %s425_s26 = scalar_lea.vmem %s2121_s8, %s1315_s9 }
  0xa6   : > { %1367 = vmatprep.subr.mxu0 %v1776_v0  ;;  %1378 = vmatprep.subr.mxu1 %v1776_v0 }
  0xa7   : > { %1368 = vmatpush3.msra.mxu0 %v434_v7  ;;  %1379 = vmatpush3.msra.mxu1 %v516_v9 }
  0xa8   : > { %1370 = vmatmul.mubr.msk.f32.vlgmr.msra.gmra.mxu0 %vm442_vm1, %v433_v8  ;;  %1381 = vmatmul.mubr.msk.f32.vlgmr.msra.gmra.mxu1 %vm442_vm1, %v433_v8 }
  0xa9   : > { %1383 = vmatprep.subr.mxu1 %v1776_v0  ;;  %1385 = vmatprep.mubr.msk.f32.mxu1 %vm1777_vm0, %v1776_v0 }
  0xaa   : > { %1393 = vmatprep.subr.mxu0 %v1776_v0  ;;  %1395 = vmatprep.mubr.msk.f32.mxu0 %vm1777_vm0, %v1776_v0 }
  0xab   : > { %1384 = vmatpush3.xpose.msk.msra.mxu1 %vm442_vm1, %v426_v10  ;;  %1394 = vmatpush3.msk.msra.mxu0 %vm692_vm2, %v427_v17 }
  0xac   : > { %1388 = vmatprep.subr.mxu1 %v1776_v0  ;;  %1403 = vmatprep.subr.mxu0 %v1776_v0 }
 0x168   : > { %v512_v12 = vpop.f32.mrf.mxu0  ;;  %v590_v14 = vpop.f32.mrf.mxu1 }
 0x169   : > { %v513_v13 = vadd.f32 %v1316_v11, %v512_v12  ;;  %v591_v44 = vadd.f32 %v1318_v42, %v590_v14 }
 0x16a   : > { %v1371_v15 = vpop.f32.mrf.mxu0  ;;  %v1382_v16 = vpop.f32.mrf.mxu1 }
 0x16b   : > { %1386 = vmatmul.mubr.msk.f32.vlgmr.msra.gmra.mxu1 %vm442_vm1, %v513_v13 }
 0x16c   : > { %1390 = vmatprep.mubr.msk.f32.mxu1 %vm1777_vm0, %v1776_v0  ;;  %1389 = vmatpush3.msk.msra.mxu1 %vm692_vm2, %v427_v17 }
 0x16d   : > { %1398 = vmatprep.subr.mxu1 %v1776_v0 }
 0x22b   : > { %v666_v18 = vpop.f32.mrf.mxu1 }
 0x22c   : > { %v671_v19 = vsel %vm670_vm3, %v666_v18, -inf }
 0x22d   : > { %v672_v20 = vrot.slane %v671_v19, 4  ;;  %v1387_v21 = vpop.f32.mrf.mxu1 }
 0x22f   : > { %v673_v22 = vmax.f32 %v671_v19, %v672_v20 }
 0x231   : > { %v674_v24 = vrot.slane %v673_v22, 2 }
 0x233   : > { %v675_v25 = vmax.f32 %v673_v22, %v674_v24 }
 0x235   : > { %v676_v27 = vrot.slane %v675_v25, 1 }
 0x237   : > { %v677_v29 = vmax.f32 %v675_v25, %v676_v27 }
 0x239   : > { %v678_v31 = vmax.f32 %v677_v29, %v432_v28 }
 0x23b   : > { %v682_v32 = vrot.slane %v678_v31, %v681_v30  ;;  %v686_v33 = vsub.f32 %v432_v28, %v678_v31 }
 0x23d   : > { %v683_v34 = vsub.f32 %v666_v18, %v682_v32  ;;  %v687_v35 = vmul.f32 1.442695, %v686_v33 }
 0x23f   : > { %v684_v36 = vmul.f32 1.442695, %v683_v34  ;;  %1523 = vpow2.f32 %v687_v35 }
 0x241   : > { %1525 = vpow2.f32 %v684_v36 }
 0x24c   : > { %v1524_v39 = vpop.eup %1523 }
 0x24d   : > { %1396 = vmatmul.mubr.msk.f32.vlgmr.msra.gmra.mxu0 %vm670_vm3, %v1524_v39  ;;  %v926_v48 = vrot.slane %v1524_v39, %v681_v30 }
 0x24e   : > { %v1526_v41 = vpop.eup %1525  ;;  %1405 = vmatprep.mubr.msk.f32.mxu0 %vm1777_vm0, %v1776_v0 }
 0x24f   : > { %1391 = vmatmul.mubr.msk.f32.vlgmr.msra.gmra.mxu1 %vm670_vm3, %v1526_v41  ;;  %1404 = vmatpush3.msra.mxu0 %v1526_v41 }
 0x250   : > { %1400 = vmatprep.mubr.msk.f32.mxu1 %vm1777_vm0, %v1776_v0  ;;  %1413 = vmatprep.subr.mxu0 %v1776_v0 }
 0x251   : > { %1406 = vmatmul.mubr.msk.f32.vlgmr.msra.gmra.mxu0 %vm848_vm4, %v843_v40 }
 0x252   : > { %1421 = vmatprep.mubr.msk.f32.mxu0 %vm1777_vm0, %v1776_v0  ;;  %1414 = vmatpush3.msra.mxu0 %v1080_v56 }
 0x253   : > { %1415 = vmatprep.subr.mxu0 %v1776_v0 }
 0x254   : > { %1416 = vmatpush3.msra.mxu0 %v1079_v57 }
 0x255   : > { %1417 = vmatprep.subr.mxu0 %v1776_v0 }
 0x256   : > { %1418 = vmatpush3.msra.mxu0 %v1078_v58 }
 0x257   : > { %1419 = vmatprep.subr.mxu0 %v1776_v0 }
 0x258   : > { %1420 = vmatpush3.msra.mxu0 %v1077_v59 }
 0x30d   : > { %v836_v43 = vpop.f32.mrf.mxu0 }
 0x30e   : > { %v840_v61 = vmul.f32 %v836_v43, %v431_v60 }
 0x30f   : > { %v762_v45 = vpop.f32.mrf.mxu1  ;;  %v1397_v46 = vpop.f32.mrf.mxu0 }
 0x310   : > { %v766_v47 = vmul.f32 %v762_v45, %v591_v44  ;;  %v847_v62 = vrot.slane %v840_v61, %v681_v30 }
 0x311   : > { %v1392_v49 = vpop.f32.mrf.mxu1  ;;  %v993_v50 = vpop.f32.mrf.mxu0 }
 0x312   : > { %v994_v51 = vadd.f32 %v993_v50, %v926_v48  ;;  %1399 = vmatpush3.msra.mxu1 %v766_v47 }
 0x313   : > { %1401 = vmatmul.mubr.msk.f32.vlgmr.msra.gmra.mxu1 %vm848_vm4, %v843_v40  ;;  %v1407_v52 = vpop.f32.mrf.mxu0  ;;  %1408 = vmatprep.subr.mxu1 %v1776_v0 }
 0x314   : > { %997 = vst.msk [vmem:[#allocation3] sm:$0xff] %vm670_vm3, %v994_v51  ;;  %1409 = vmatpush3.msk.msra.mxu1 %vm692_vm2, %v427_v17  ;;  %1410 = vmatprep.mubr.msk.f32.mxu1 %vm1777_vm0, %v1776_v0  ;;  %v1330_v0 = vld [vmem:[#allocation9 + $0x2] ss:$0 sm:$0xff] }
 0x31b   : > { %v998_v53 = vld [vmem:[#allocation3] sm:$0xff] }
 0x31c   : > { %v999_v54 = vmax.f32 %v998_v53, 1.1754944e-38 }
 0x31e   : > { %1527 = vrcp.f32 %v999_v54 }
 0x32b   : > { %v1528_v55 = vpop.eup %1527 }
 0x32c   : > { %1411 = vmatmul.mubr.msk.f32.vlgmr.msra.gmra.mxu1 %vm670_vm3, %v1528_v55 }
 0x3d3   : > { %v918_v63 = vpop.f32.mrf.mxu1 }
 0x3d4   : > { %v919_v1 = vadd.f32 %v918_v63, %v847_v62 }
 0x3d5   : > { %v1402_v2 = vpop.f32.mrf.mxu1 }
 0x3d6   : > { %922 = vst.msk [vmem:[#allocation2] sm:$0xff] %vm442_vm1, %v919_v1 }
 0x3dd   : > { %v1002_v3 = vld [vmem:[#allocation2] sm:$0xff] }
 0x3ec   : > { %v1072_v4 = vpop.f32.mrf.mxu1 }
 0x3ed   : > { %v1076_v5 = vmul.f32 %v1072_v4, %v1002_v3 }
 0x3ee   : > { %v1412_v6 = vpop.f32.mrf.mxu1 }
 0x3ef   : > { %1422 = vmatmul.mubr.msk.f32.vlgmr.msra.gmra.mxu0 %vm442_vm1, %v1076_v5 }
 0x4af   : > { %v1154_v7 = vpop.f32.mrf.mxu0 }
 0x4b0   : > { %v1155_v8 = vadd.f32 %v1330_v0, %v1154_v7 }
 0x4b1   : > { %v1423_v9 = vpop.f32.mrf.mxu0 }
 0x4b2   : > { %1159 = vst.msk [vmem:[%s425_s26] sm:$0x3f] %vm1158_vm5, %v1155_v8 }
 0x4b3 PF: > { %p23_p1 = scmp.ge.s32.totalorder %s1919_s15, 4   ;;  %s2142_s27 = smov %s1757_s28 }
 0x4b4   : > { %s2143_s28 = smov %s1761_s29  ;;  %s2144_s29 = smov %s1930_s13 }
 0x4b5   : > { %s2145_s30 = smov %s1919_s15  ;;  %25 = sbr.rel (!%p23_p1) target bundleno = 9 (0x9), region = 125 }
 0x4ba   :  { %1179 = vsyncpa [#allocation5], 1 }
 0x4bb   :  { %1181 = vsyncpa [#allocation5 + $0x1], 1 }
 0x4bc   :  { %1182 = vsyncpa [#allocation7], 1 }
 0x4bd   :  { %1184 = vsyncpa [#allocation7 + $0x1], 1 }
 0x4be   :  { %1185 = vsyncpa [#allocation10], 1 }
 0x4bf   :  { %1186 = vsyncpa [#allocation13], 1 }

// kernel: tpu_custom_call.1
= control target key start
LH: loop header
LB: loop body
LE: loop exit
PB: predicated region body
PF: predicated region fallthrough
CT: control target
= control target key end

     0   :  { %s2113_s0 = inlined_call_operand.hbm [shape: f32[2,8,32], index: 0, kind: input, shape index: {}]   ;;  %s2114_s1 = inlined_call_operand.hbm [shape: s8[2,8,8], index: 1, kind: input, shape index: {}]   ;;  %s2115_s2 = inlined_call_operand.hbm [shape: f32[4,32], index: 2, kind: input, shape index: {}]   ;;  %s2116_s3 = inlined_call_operand.vmem [shape: f32[4,32], index: 3, kind: input, shape index: {}]   ;;  %s2117_s4 = inlined_call_operand.hbm [shape: f32[8,32], index: 4, kind: input, shape index: {}]   ;;  %s2118_s5 = inlined_call_operand.hbm [shape: f32[32,32], index: 5, kind: input, shape index: {}]   ;;  %s2119_s6 = inlined_call_operand.hbm [shape: f32[32,32], index: 6, kind: input, shape index: {}]   ;;  %s2120_s7 = inlined_call_operand.hbm [shape: f32[32,32], index: 7, kind: input, shape index: {}]   ;;  %s2121_s8 = inlined_call_operand.vmem [shape: f32[2,6,32], index: 8, kind: output, shape index: {}]  }
   0x1   :  { %2125 = sst [smem:[#allocation20_spill]] %s2113_s0 }
   0x2   :  { %13 = vsyncpa [#allocation5], 0 }
   0x3   :  { %15 = vsyncpa [#allocation5 + $0x1], 0 }
   0x4   :  { %16 = vsyncpa [#allocation7], 0 }
   0x5   :  { %18 = vsyncpa [#allocation7 + $0x1], 0 }
   0x6   :  { %19 = vsyncpa [#allocation10], 0 }
   0x7   :  { %20 = vsyncpa [#allocation13], 0  ;;  %s1823_s27 = smov 0   ;;  %s1825_s28 = smov 0  }
   0x8   :  { %s1827_s29 = smov 0   ;;  %s1829_s30 = smov 0  }
   0x9 LB: > { %s1767_s9 = smov [#allocation8]   ;;  %s1844_s11 = sadd.s32 4294967295, %s1765_s30   ;;  %s1765_s30 = sphi %s1829_s30, %s2145_s30   ;;  %s1761_s29 = sphi %s1827_s29, %s2144_s29   ;;  %s1757_s28 = sphi %s1825_s28, %s2143_s28   ;;  %s1753_s27 = sphi %s1823_s27, %s2142_s27  }
   0xa   : > { %s248_s10 = sshll.u32 %s1767_s9, 4  ;;  %p1296_p0 = scmp.ge.s32.totalorder %s1765_s30, 1  ;;  %s249_s10 = int_to_ptr.vmem [resolvable:$true] %s248_s10 }
   0xb   : > { %p2122_p1 = scmp.eq.s32.totalorder %s1844_s11, 0  ;;  %p235_p2 = scmp.lt.s32.totalorder %s1765_s30, 3 }
   0xc   : > { %s1768_s13 = smov [#allocation9]   ;;  %s1769_s16 = smov [#allocation12]  }
   0xd   : > { %p1849_p3 = pnand %p1296_p0, %p235_p2  ;;  %s262_s14 = sshll.u32 %s1768_s13, 4  ;;  %s263_s14 = int_to_ptr.vmem [resolvable:$true] %s262_s14 }
   0xe   : > { %s285_s17 = sshll.u32 %s1769_s16, 4  ;;  %s1540_s19 = scalar_lea.vmem %s249_s10, 64  ;;  %s1861_s17 = int_to_ptr.vmem [resolvable:$true] %s285_s17 }
   0xf   : > { %s2126_s12 = scalar_select %p1849_p3, 1, 0 }
  0x10   : > { %p1448_p4 = pneg %p1849_p3  ;;  %p1541_p7 = scmp.ne.s32.totalorder %s249_s10, %s1540_s19 }
  0x11   : > { %p1548_p10 = scmp.lt.s32.totalorder %s249_s10, %s249_s10  ;;  %p1549_p11 = scmp.lt.s32.totalorder %s1540_s19, %s1540_s19 }
  0x12   : > { %p1857_p5 = pnand %p1448_p4, %p2122_p1 }
  0x13   : > { %p1550_p12 = por %p1549_p11, %p1548_p10 }
  0x14   : > { %p1865_p6 = pneg %p1857_p5 }
  0x16   : > { %p1543_p8 = pnand %p1541_p7, %p1865_p6 }
  0x18   : > { %p1544_p9 = pneg %p1543_p8 }
  0x1a   : > { %p1551_p13 = pnand %p1550_p12, %p1544_p9 }
  0x1c   : > { %1554 = shalt.err (!%p1551_p13)
}
  0x1d   : > { %1451 = dma.hbm_to_vmem [thread:$0]  (!%p1857_p5), %s2115_s2, 64, %s249_s10, [#allocation7]  }
  0x1e   : > { %s1566_s22 = scalar_lea.vmem %s263_s14, 128  ;;  %p1574_p1 = scmp.lt.s32.totalorder %s263_s14, %s263_s14 }
  0x1f   : > { %p1567_p0 = scmp.ne.s32.totalorder %s263_s14, %s1566_s22  ;;  %p1575_p7 = scmp.lt.s32.totalorder %s1566_s22, %s1566_s22 }
  0x21   : > { %p1569_p2 = pnand %p1567_p0, %p1865_p6  ;;  %p1576_p8 = por %p1575_p7, %p1574_p1 }
  0x23   : > { %p1570_p4 = pneg %p1569_p2 }
  0x25   : > { %p1577_p3 = pnand %p1576_p8, %p1570_p4 }
  0x27   : > { %1580 = shalt.err (!%p1577_p3)
}
  0x28   : > { %1454 = dma.hbm_to_vmem [thread:$0]  (!%p1857_p5), %s2117_s4, 128, %s263_s14, [#allocation10]  }
  0x29   : > { %s1592_s25 = scalar_lea.vmem %s1861_s17, 512  ;;  %p1600_p12 = scmp.lt.s32.totalorder %s1861_s17, %s1861_s17 }
  0x2a   : > { %p1593_p9 = scmp.ne.s32.totalorder %s1861_s17, %s1592_s25  ;;  %p1601_p1 = scmp.lt.s32.totalorder %s1592_s25, %s1592_s25 }
  0x2c   : > { %p1595_p10 = pnand %p1593_p9, %p1865_p6  ;;  %p1602_p13 = por %p1601_p1, %p1600_p12 }
  0x2e   : > { %p1596_p11 = pneg %p1595_p10 }
  0x30   : > { %p1603_p3 = pnand %p1602_p13, %p1596_p11 }
  0x32   : > { %1606 = shalt.err (!%p1603_p3)
}
  0x33   : > { %s1770_s26 = smov 128   ;;  %s1771_s9 = smov 8  }
  0x34   : > { %1460 = dma.hbm_to_vmem [thread:$0]  (!%p1857_p5), %s2119_s6, 512, %s1861_s17, [#allocation13], %s1770_s26, %s1770_s26, %s1771_s9  }
  0x35   : > { %s1772_s14 = smov [#allocation11]   ;;  %s1773_s19 = smov [#allocation14]  }
  0x36   : > { %s272_s16 = sshll.u32 %s1772_s14, 4  ;;  %s298_s20 = sshll.u32 %s1773_s19, 4  ;;  %s273_s16 = int_to_ptr.vmem [resolvable:$true] %s272_s16  ;;  %s299_s20 = int_to_ptr.vmem [resolvable:$true] %s298_s20 }
  0x37   : > { %s1618_s21 = scalar_lea.vmem %s273_s16, 512  ;;  %p1626_p7 = scmp.lt.s32.totalorder %s273_s16, %s273_s16 }
  0x38   : > { %p1619_p0 = scmp.ne.s32.totalorder %s273_s16, %s1618_s21  ;;  %p1627_p8 = scmp.lt.s32.totalorder %s1618_s21, %s1618_s21 }
  0x3a   : > { %p1621_p2 = pnand %p1619_p0, %p1865_p6  ;;  %p1628_p9 = por %p1627_p8, %p1626_p7 }
  0x3c   : > { %p1622_p4 = pneg %p1621_p2 }
  0x3e   : > { %p1629_p10 = pnand %p1628_p9, %p1622_p4 }
  0x40   : > { %1632 = shalt.err (!%p1629_p10)
}
  0x41   : > { %1457 = dma.hbm_to_vmem [thread:$0]  (!%p1857_p5), %s2118_s5, 512, %s273_s16, [#allocation10], %s1770_s26, %s1770_s26, %s1771_s9  }
  0x42   : > { %s1644_s23 = scalar_lea.vmem %s299_s20, 512  ;;  %p1652_p13 = scmp.lt.s32.totalorder %s299_s20, %s299_s20 }
  0x43   : > { %p1645_p11 = scmp.ne.s32.totalorder %s299_s20, %s1644_s23  ;;  %p1653_p3 = scmp.lt.s32.totalorder %s1644_s23, %s1644_s23 }
  0x45   : > { %p1647_p12 = pnand %p1645_p11, %p1865_p6  ;;  %p1654_p0 = por %p1653_p3, %p1652_p13 }
  0x47   : > { %p1648_p1 = pneg %p1647_p12 }
  0x49   : > { %p1655_p2 = pnand %p1654_p0, %p1648_p1 }
  0x4b   : > { %1658 = shalt.err (!%p1655_p2)
}
  0x4c   : > { %1463 = dma.hbm_to_vmem [thread:$0]  (!%p1857_p5), %s2120_s7, 512, %s299_s20, [#allocation13], %s1770_s26, %s1770_s26, %s1771_s9  }
  0x4d   : > { %s1919_s15 = sadd.s32 1, %s1765_s30   ;;  %s33_s10 = sadd.s32 1, %s1761_s29 }
  0x4e   : > { %s30_s18 = ssub.s32 %s1765_s30, %s1919_s15  ;;  %p40_p4 = scmp.ne.s32.totalorder %s1761_s29, %s1757_s28 }
  0x4f   : > { %p31_p6 = scmp.eq.s32.totalorder %s30_s18, 0  ;;  %p41_p7 = scmp.eq.s32.totalorder %s1765_s30, 0 }
  0x50   : > { %p46_p8 = scmp.ne.s32.totalorder %s1757_s28, %s1753_s27  ;;  %p2129_p10 = scmp.eq.s32.totalorder %s1844_s11, 0 }
  0x51   : > { %s1930_s13 = scalar_select %p31_p6, %s1761_s29, %s33_s10  }
  0x52   : > { %p42_p9 = por %p41_p7, %p40_p4  ;;  %p1934_p11 = por %p2129_p10, %p46_p8 }
  0x53   : > { %p1476_p12 = scmp.lt.s32.totalorder %s1765_s30, 2  ;;  %s1940_s26 = sand.u32 1, %s1761_s29  }
  0x54   : > { %s2130_s14 = scalar_select %p1934_p11, 1, 0 }
  0x55   : > { %s1303_s9 = sshll.u32 %s1940_s26, 3  ;;  %s1304_s16 = sshll.u32 %s1765_s30, 7 }
  0x56   : > { %s2131_s0 = sld [smem:[#allocation20_spill]]  ;;  %s316_s21 = scalar_lea.vmem [#allocation4], %s1303_s9 }
  0x57   : > { %s323_s17 = sshll.u32 %s316_s21, 4  ;;  %p1951_p5 = pnand %p1476_p12, %p42_p9  ;;  %s1949_s17 = int_to_ptr.vmem [resolvable:$true] %s323_s17 }
  0x58   : > { %s1305_s24 = sshll.u32 %s1940_s26, 1  ;;  %s313_s25 = scalar_lea.sflag [#allocation5], %s1940_s26 }
  0x59   : > { %p1661_p13 = pneg %p1951_p5 }
  0x5c   : > { %s1947_s27 = scalar_lea.hbm %s2131_s0, %s1304_s16  ;;  %s1664_s16 = scalar_lea.hbm %s2131_s0, 256 }
  0x5d   : > { %s1659_s18 = scalar_lea.hbm %s1947_s27, 128  ;;  %p1665_p2 = scmp.lt.s32.totalorder %s1947_s27, %s2131_s0 }
  0x5e   : > { %p1660_p1 = scmp.ne.s32.totalorder %s1947_s27, %s1659_s18  ;;  %p1666_p6 = scmp.lt.s32.totalorder %s1664_s16, %s1659_s18 }
  0x60   : > { %p1662_p3 = pnand %p1661_p13, %p1660_p1  ;;  %p1667_p4 = por %p1666_p6, %p1665_p2 }
  0x62   : > { %p1663_p0 = pneg %p1662_p3 }
  0x64   : > { %p1668_p7 = pnand %p1667_p4, %p1663_p0 }
  0x66   : > { %1671 = shalt.err (!%p1668_p7)
}
  0x67   : > { %s1672_s21 = scalar_lea.vmem %s1949_s17, 128  ;;  %s1774_s10 = smov [#allocation4]  }
  0x68   : > { %p1673_p8 = scmp.ne.s32.totalorder %s1949_s17, %s1672_s21  ;;  %s1677_s9 = sshll.u32 %s1774_s10, 4  ;;  %s1678_s9 = int_to_ptr.vmem [resolvable:$false] %s1677_s9 }
  0x69   : > { %s1679_s23 = scalar_lea.vmem %s1678_s9, 256  ;;  %p1680_p12 = scmp.lt.s32.totalorder %s1949_s17, %s1678_s9 }
  0x6a   : > { %p1675_p9 = pnand %p1673_p8, %p1661_p13  ;;  %p1681_p1 = scmp.lt.s32.totalorder %s1679_s23, %s1672_s21 }
  0x6c   : > { %p1676_p10 = pneg %p1675_p9  ;;  %p1682_p3 = por %p1681_p1, %p1680_p12 }
  0x6e   : > { %p1683_p2 = pnand %p1682_p3, %p1676_p10 }
  0x70   : > { %1686 = shalt.err (!%p1683_p2)
}
  0x71   : > { %1467 = dma.hbm_to_vmem [thread:$0]  (!%p1951_p5), %s1947_s27, 128, %s1949_s17, %s313_s25  }
  0x72   : > { %s1306_s18 = sshll.u32 %s1765_s30, 5  ;;  %s334_s23 = scalar_lea.vmem [#allocation6], %s1305_s24 }
  0x73   : > { %s1986_s20 = scalar_lea.hbm %s2114_s1, %s1306_s18  ;;  %s341_s21 = sshll.u32 %s334_s23, 4  ;;  %s342_s21 = int_to_ptr.vmem [resolvable:$true] %s341_s21 }
  0x74   : > { %s2133_s10 = sand.u32 1, %s1765_s30   ;;  %s1687_s0 = scalar_lea.hbm %s1986_s20, 32 }
  0x75   : > { %s331_s9 = scalar_lea.sflag [#allocation7], %s2133_s10  ;;  %p1688_p0 = scmp.ne.s32.totalorder %s1986_s20, %s1687_s0 }
  0x76   : > { %s1692_s25 = scalar_lea.hbm %s2114_s1, 64  ;;  %p1693_p7 = scmp.lt.s32.totalorder %s1986_s20, %s2114_s1 }
  0x77   : > { %p1690_p6 = pnand %p1688_p0, %p1661_p13  ;;  %p1694_p8 = scmp.lt.s32.totalorder %s1692_s25, %s1687_s0 }
  0x79   : > { %p1691_p4 = pneg %p1690_p6  ;;  %p1695_p9 = por %p1694_p8, %p1693_p7 }
  0x7b   : > { %p1696_p10 = pnand %p1695_p9, %p1691_p4 }
  0x7d   : > { %1699 = shalt.err (!%p1696_p10)
}
  0x7e   : > { %s1700_s30 = scalar_lea.vmem %s342_s21, 32  ;;  %s1775_s24 = smov [#allocation6]  }
  0x7f   : > { %p1701_p12 = scmp.ne.s32.totalorder %s342_s21, %s1700_s30  ;;  %s1705_s16 = sshll.u32 %s1775_s24, 4  ;;  %s1706_s16 = int_to_ptr.vmem [resolvable:$false] %s1705_s16 }
  0x80   : > { %s1707_s19 = scalar_lea.vmem %s1706_s16, 64  ;;  %p1708_p2 = scmp.lt.s32.totalorder %s342_s21, %s1706_s16 }
  0x81   : > { %p1703_p1 = pnand %p1701_p12, %p1661_p13  ;;  %p1709_p0 = scmp.lt.s32.totalorder %s1707_s19, %s1700_s30 }
  0x83   : > { %p1704_p3 = pneg %p1703_p1  ;;  %p1710_p6 = por %p1709_p0, %p1708_p2 }
  0x85   : > { %p1711_p11 = pnand %p1710_p6, %p1704_p3 }
  0x87   : > { %1714 = shalt.err (!%p1711_p11)
}
  0x88   : > { %1470 = dma.hbm_to_vmem [thread:$0]  (!%p1951_p5), %s1986_s20, 32, %s342_s21, %s331_s9  }
  0x89   : > { %p2134_p4 = scmp.ne.s32.totalorder %s2126_s12, 0 }
  0x8a   : > { %s352_s0 = sand.u32 (!%p2134_p4), 1, %s1757_s28   ;;  %p2135_p13 = scmp.ne.s32.totalorder (!%p2134_p4), %s2130_s14, 0 }
  0x8b   : > { %350 = sbr.rel (%p2134_p4) target bundleno = 1203 (0x4b3), region = 52  ;;  %s1308_s23 = sshll.u32 (!%p2134_p4), %s352_s0, 3 }
  0x8c   : > { %s353_s10 = scalar_lea.sflag (!%p2134_p4), [#allocation5], %s352_s0  ;;  %s2013_s27 = scalar_lea.vmem (!%p2134_p4), [#allocation4], %s1308_s23 }
  0x90   : > { %1732 = dma.done.wait (%p2135_p13), %s353_s10, 128  }
  0x91   : > { %1734 = vsyncadd (%p2135_p13), %s353_s10, 4294967168  ;;  %s361_s22 = sand.u32 1, %s1844_s11   ;;  %s1309_s17 = sshll.u32 %s352_s0, 1 }
  0x92   : > { %s362_s20 = scalar_lea.sflag [#allocation7], %s361_s22  ;;  %s2020_s21 = scalar_lea.vmem [#allocation6], %s1309_s17 }
  0x93   : > { %1736 = dma.done.wait (%p2135_p13), %s362_s20, 32  }
  0x94   : > { %1738 = vsyncadd (%p2135_p13), %s362_s20, 4294967264  ;;  %p2136_p11 = scmp.eq.s32.totalorder %s1844_s11, 0 }
  0x96   : > { %1740 = dma.done.wait (%p2136_p11), [#allocation7], 64   ;;  %p2137_p5 = pmov %p2136_p11 }
  0x98   : > { %1742 = vsyncadd (%p2137_p5), [#allocation7], 4294967232  ;;  %p2138_p7 = pmov %p2137_p5 }
  0x99   : > { %p2139_p8 = pmov %p2137_p5 }
  0x9a   : > { %1744 = dma.done.wait (%p2138_p7), [#allocation10], 640  }
  0x9b   : > { %1746 = vsyncadd (%p2139_p8), [#allocation10], 4294966656  ;;  %p2140_p9 = pmov %p2137_p5 }
  0x9c   : > { %p2141_p10 = pmov %p2137_p5 }
  0x9d   : > { %1748 = dma.done.wait (%p2140_p9), [#allocation13], 1024  }
  0x9e   : > { %1750 = vsyncadd (%p2141_p10), [#allocation13], 4294966272  ;;  %v1776_v0 = vmov 0.0   ;;  %vm1777_vm0 = vmmov 0   ;;  %v437_v1 = vld [vmem:[#allocation11 + $0x18] sm:$0xff]  ;;  %v436_v2 = vld [vmem:[#allocation11 + $0x10] sm:$0xff]  ;;  %v679_v23 = vlaneseq }
  0x9f   : > { %1361 = vmatprep.subr.mxu0 %v1776_v0  ;;  %1369 = vmatprep.mubr.msk.f32.mxu0 %vm1777_vm0, %v1776_v0  ;;  %v519_v3 = vld [vmem:[#allocation12 + $0x18] sm:$0xff]  ;;  %v435_v4 = vld [vmem:[#allocation11 + $0x8] sm:$0xff]  ;;  %v518_v5 = vld [vmem:[#allocation12 + $0x10] sm:$0xff]  ;;  %vm442_vm1 = vcmask 261120   ;;  %vm692_vm2 = vcmask 1043456   ;;  %vm670_vm3 = vcmask 31744  }
  0xa0   : > { %1372 = vmatprep.subr.mxu1 %v1776_v0  ;;  %1380 = vmatprep.mubr.msk.f32.mxu1 %vm1777_vm0, %v1776_v0  ;;  %v517_v6 = vld [vmem:[#allocation12 + $0x8] sm:$0xff]  ;;  %v434_v7 = vld [vmem:[#allocation11] sm:$0xff]  ;;  %v426_v10 = vld [vmem:[#allocation8] sm:$0xf]  ;;  %v680_v26 = vshrl.u32 %v679_v23, 7  ;;  %vm848_vm4 = vcmask 64512  }
  0xa1   : > { %1362 = vmatpush3.msra.mxu0 %v437_v1  ;;  %1373 = vmatpush3.msra.mxu1 %v519_v3  ;;  %v433_v8 = vld [vmem:[%s2013_s27] sm:$0xff]  ;;  %v1316_v11 = vld [vmem:[#allocation9] ss:$0 sm:$0xff]  ;;  %v427_v17 = vld [vmem:[%s2116_s3] sm:$0xf]  ;;  %p422_p12 = scmp.lt.s32.totalorder %s1844_s11, 1 }
  0xa2   : > { %1363 = vmatprep.subr.mxu0 %v1776_v0  ;;  %1374 = vmatprep.subr.mxu1 %v1776_v0  ;;  %v516_v9 = vld [vmem:[#allocation12] sm:$0xff]  ;;  %v432_v28 = vld [vmem:[#allocation9 + $0x4] sm:$0x1]  ;;  %v681_v30 = vsub.s32 0, %v680_v26  ;;  %v841_v37 = vld [vmem:[%s2020_s21] sm:$0x3] }
  0xa3   : > { %1364 = vmatpush3.msra.mxu0 %v436_v2  ;;  %1375 = vmatpush3.msra.mxu1 %v518_v5  ;;  %v842_v38 = vunpack.c.0.s8 %v841_v37  ;;  %v1318_v42 = vld [vmem:[#allocation9 + $0x1] ss:$0 sm:$0xff]  ;;  %v1079_v57 = vld [vmem:[#allocation14 + $0x10] sm:$0xff]  ;;  %v1078_v58 = vld [vmem:[#allocation14 + $0x8] sm:$0xff]  ;;  %s2147_s11 = smov (!%p422_p12, %s1844_s11), 1  ;;  %vm1158_vm5 = vcmask 259072  }
  0xa4   : > { %1365 = vmatprep.subr.mxu0 %v1776_v0  ;;  %1376 = vmatprep.subr.mxu1 %v1776_v0  ;;  %v1080_v56 = vld [vmem:[#allocation14 + $0x18] sm:$0xff]  ;;  %v1077_v59 = vld [vmem:[#allocation14] sm:$0xff]  ;;  %s1315_s9 = sshll.u32 %s2147_s11, 3 }
  0xa5   : > { %1366 = vmatpush3.msra.mxu0 %v435_v4  ;;  %1377 = vmatpush3.msra.mxu1 %v517_v6  ;;  %v843_v40 = vcvt.s32.f32 %v842_v38  ;;  %v431_v60 = vld [vmem:[#allocation9 + $0x3] sm:$0x1]  ;;  %s425_s26 = scalar_lea.vmem %s2121_s8, %s1315_s9 }
  0xa6   : > { %1367 = vmatprep.subr.mxu0 %v1776_v0  ;;  %1378 = vmatprep.subr.mxu1 %v1776_v0 }
  0xa7   : > { %1368 = vmatpush3.msra.mxu0 %v434_v7  ;;  %1379 = vmatpush3.msra.mxu1 %v516_v9 }
  0xa8   : > { %1370 = vmatmul.mubr.msk.f32.vlgmr.msra.gmra.mxu0 %vm442_vm1, %v433_v8  ;;  %1381 = vmatmul.mubr.msk.f32.vlgmr.msra.gmra.mxu1 %vm442_vm1, %v433_v8 }
  0xa9   : > { %1383 = vmatprep.subr.mxu1 %v1776_v0  ;;  %1385 = vmatprep.mubr.msk.f32.mxu1 %vm1777_vm0, %v1776_v0 }
  0xaa   : > { %1393 = vmatprep.subr.mxu0 %v1776_v0  ;;  %1395 = vmatprep.mubr.msk.f32.mxu0 %vm1777_vm0, %v1776_v0 }
  0xab   : > { %1384 = vmatpush3.xpose.msk.msra.mxu1 %vm442_vm1, %v426_v10  ;;  %1394 = vmatpush3.msk.msra.mxu0 %vm692_vm2, %v427_v17 }
  0xac   : > { %1388 = vmatprep.subr.mxu1 %v1776_v0  ;;  %1403 = vmatprep.subr.mxu0 %v1776_v0 }
 0x168   : > { %v512_v12 = vpop.f32.mrf.mxu0  ;;  %v590_v14 = vpop.f32.mrf.mxu1 }
 0x169   : > { %v513_v13 = vadd.f32 %v1316_v11, %v512_v12  ;;  %v591_v44 = vadd.f32 %v1318_v42, %v590_v14 }
 0x16a   : > { %v1371_v15 = vpop.f32.mrf.mxu0  ;;  %v1382_v16 = vpop.f32.mrf.mxu1 }
 0x16b   : > { %1386 = vmatmul.mubr.msk.f32.vlgmr.msra.gmra.mxu1 %vm442_vm1, %v513_v13 }
 0x16c   : > { %1390 = vmatprep.mubr.msk.f32.mxu1 %vm1777_vm0, %v1776_v0  ;;  %1389 = vmatpush3.msk.msra.mxu1 %vm692_vm2, %v427_v17 }
 0x16d   : > { %1398 = vmatprep.subr.mxu1 %v1776_v0 }
 0x22b   : > { %v666_v18 = vpop.f32.mrf.mxu1 }
 0x22c   : > { %v671_v19 = vsel %vm670_vm3, %v666_v18, -inf }
 0x22d   : > { %v672_v20 = vrot.slane %v671_v19, 4  ;;  %v1387_v21 = vpop.f32.mrf.mxu1 }
 0x22f   : > { %v673_v22 = vmax.f32 %v671_v19, %v672_v20 }
 0x231   : > { %v674_v24 = vrot.slane %v673_v22, 2 }
 0x233   : > { %v675_v25 = vmax.f32 %v673_v22, %v674_v24 }
 0x235   : > { %v676_v27 = vrot.slane %v675_v25, 1 }
 0x237   : > { %v677_v29 = vmax.f32 %v675_v25, %v676_v27 }
 0x239   : > { %v678_v31 = vmax.f32 %v677_v29, %v432_v28 }
 0x23b   : > { %v682_v32 = vrot.slane %v678_v31, %v681_v30  ;;  %v686_v33 = vsub.f32 %v432_v28, %v678_v31 }
 0x23d   : > { %v683_v34 = vsub.f32 %v666_v18, %v682_v32  ;;  %v687_v35 = vmul.f32 1.442695, %v686_v33 }
 0x23f   : > { %v684_v36 = vmul.f32 1.442695, %v683_v34  ;;  %1523 = vpow2.f32 %v687_v35 }
 0x241   : > { %1525 = vpow2.f32 %v684_v36 }
 0x24c   : > { %v1524_v39 = vpop.eup %1523 }
 0x24d   : > { %1396 = vmatmul.mubr.msk.f32.vlgmr.msra.gmra.mxu0 %vm670_vm3, %v1524_v39  ;;  %v926_v48 = vrot.slane %v1524_v39, %v681_v30 }
 0x24e   : > { %v1526_v41 = vpop.eup %1525  ;;  %1405 = vmatprep.mubr.msk.f32.mxu0 %vm1777_vm0, %v1776_v0 }
 0x24f   : > { %1391 = vmatmul.mubr.msk.f32.vlgmr.msra.gmra.mxu1 %vm670_vm3, %v1526_v41  ;;  %1404 = vmatpush3.msra.mxu0 %v1526_v41 }
 0x250   : > { %1400 = vmatprep.mubr.msk.f32.mxu1 %vm1777_vm0, %v1776_v0  ;;  %1413 = vmatprep.subr.mxu0 %v1776_v0 }
 0x251   : > { %1406 = vmatmul.mubr.msk.f32.vlgmr.msra.gmra.mxu0 %vm848_vm4, %v843_v40 }
 0x252   : > { %1421 = vmatprep.mubr.msk.f32.mxu0 %vm1777_vm0, %v1776_v0  ;;  %1414 = vmatpush3.msra.mxu0 %v1080_v56 }
 0x253   : > { %1415 = vmatprep.subr.mxu0 %v1776_v0 }
 0x254   : > { %1416 = vmatpush3.msra.mxu0 %v1079_v57 }
 0x255   : > { %1417 = vmatprep.subr.mxu0 %v1776_v0 }
 0x256   : > { %1418 = vmatpush3.msra.mxu0 %v1078_v58 }
 0x257   : > { %1419 = vmatprep.subr.mxu0 %v1776_v0 }
 0x258   : > { %1420 = vmatpush3.msra.mxu0 %v1077_v59 }
 0x30d   : > { %v836_v43 = vpop.f32.mrf.mxu0 }
 0x30e   : > { %v840_v61 = vmul.f32 %v836_v43, %v431_v60 }
 0x30f   : > { %v762_v45 = vpop.f32.mrf.mxu1  ;;  %v1397_v46 = vpop.f32.mrf.mxu0 }
 0x310   : > { %v766_v47 = vmul.f32 %v762_v45, %v591_v44  ;;  %v847_v62 = vrot.slane %v840_v61, %v681_v30 }
 0x311   : > { %v1392_v49 = vpop.f32.mrf.mxu1  ;;  %v993_v50 = vpop.f32.mrf.mxu0 }
 0x312   : > { %v994_v51 = vadd.f32 %v993_v50, %v926_v48  ;;  %1399 = vmatpush3.msra.mxu1 %v766_v47 }
 0x313   : > { %1401 = vmatmul.mubr.msk.f32.vlgmr.msra.gmra.mxu1 %vm848_vm4, %v843_v40  ;;  %v1407_v52 = vpop.f32.mrf.mxu0  ;;  %1408 = vmatprep.subr.mxu1 %v1776_v0 }
 0x314   : > { %997 = vst.msk [vmem:[#allocation3] sm:$0xff] %vm670_vm3, %v994_v51  ;;  %1409 = vmatpush3.msk.msra.mxu1 %vm692_vm2, %v427_v17  ;;  %1410 = vmatprep.mubr.msk.f32.mxu1 %vm1777_vm0, %v1776_v0  ;;  %v1330_v0 = vld [vmem:[#allocation9 + $0x2] ss:$0 sm:$0xff] }
 0x31b   : > { %v998_v53 = vld [vmem:[#allocation3] sm:$0xff] }
 0x31c   : > { %v999_v54 = vmax.f32 %v998_v53, 1.1754944e-38 }
 0x31e   : > { %1527 = vrcp.f32 %v999_v54 }
 0x32b   : > { %v1528_v55 = vpop.eup %1527 }
 0x32c   : > { %1411 = vmatmul.mubr.msk.f32.vlgmr.msra.gmra.mxu1 %vm670_vm3, %v1528_v55 }
 0x3d3   : > { %v918_v63 = vpop.f32.mrf.mxu1 }
 0x3d4   : > { %v919_v1 = vadd.f32 %v918_v63, %v847_v62 }
 0x3d5   : > { %v1402_v2 = vpop.f32.mrf.mxu1 }
 0x3d6   : > { %922 = vst.msk [vmem:[#allocation2] sm:$0xff] %vm442_vm1, %v919_v1 }
 0x3dd   : > { %v1002_v3 = vld [vmem:[#allocation2] sm:$0xff] }
 0x3ec   : > { %v1072_v4 = vpop.f32.mrf.mxu1 }
 0x3ed   : > { %v1076_v5 = vmul.f32 %v1072_v4, %v1002_v3 }
 0x3ee   : > { %v1412_v6 = vpop.f32.mrf.mxu1 }
 0x3ef   : > { %1422 = vmatmul.mubr.msk.f32.vlgmr.msra.gmra.mxu0 %vm442_vm1, %v1076_v5 }
 0x4af   : > { %v1154_v7 = vpop.f32.mrf.mxu0 }
 0x4b0   : > { %v1155_v8 = vadd.f32 %v1330_v0, %v1154_v7 }
 0x4b1   : > { %v1423_v9 = vpop.f32.mrf.mxu0 }
 0x4b2   : > { %1159 = vst.msk [vmem:[%s425_s26] sm:$0x3f] %vm1158_vm5, %v1155_v8 }
 0x4b3 PF: > { %p23_p1 = scmp.ge.s32.totalorder %s1919_s15, 4   ;;  %s2142_s27 = smov %s1757_s28 }
 0x4b4   : > { %s2143_s28 = smov %s1761_s29  ;;  %s2144_s29 = smov %s1930_s13 }
 0x4b5   : > { %s2145_s30 = smov %s1919_s15  ;;  %25 = sbr.rel (!%p23_p1) target bundleno = 9 (0x9), region = 125 }
 0x4ba   :  { %1179 = vsyncpa [#allocation5], 1 }
 0x4bb   :  { %1181 = vsyncpa [#allocation5 + $0x1], 1 }
 0x4bc   :  { %1182 = vsyncpa [#allocation7], 1 }
 0x4bd   :  { %1184 = vsyncpa [#allocation7 + $0x1], 1 }
 0x4be   :  { %1185 = vsyncpa [#allocation10], 1 }
 0x4bf   :  { %1186 = vsyncpa [#allocation13], 1 }

</bundles_post_ra>
